<compile_context>
chip_gen: v6e
topology: v6e:2x2x1
jax: 0.10.0
libtpu: 0.0.40
codegen_flags: <defaults>
</compile_context>

<pallas_src>
import jax
import jax.numpy as jnp
from jax.experimental import pallas as pl
from jax.experimental.pallas import tpu as pltpu


def _round_up(x, m):
    return (x + m - 1) // m * m


def _pick_batch_tile(B, max_tile=512):
    """Sublane-aligned batch tile; >= 2 grid steps when B is large enough so a
    v7x chip's second TensorCore gets work; capped at max_tile to amortize the
    per-grid-step overhead without blowing VMEM."""
    if B <= 16:
        return 16
    if B <= 2 * max_tile:
        return _round_up(pl.cdiv(B, 2), 16)   # >= 2 grid steps
    return max_tile


def discriminator_kernel(x_ref, w1_ref, b1_ref, w2_ref, b2_ref, w3_ref, b3_ref, o_ref):
    # Hoist bias reads once per grid step.
    b1 = b1_ref[...]                            # (1, H1) f32
    b2 = b2_ref[...]                            # (1, H2) f32
    b3 = b3_ref[...]                            # (1, 1)  f32

    # x tile arrives as f32 straight from HBM; cast to bf16 here on the VPU
    # (hidden under the MXU work) instead of a separate wrapper-side HBM pass.
    x = x_ref[...].astype(jnp.bfloat16)         # (TB, D)

    # Layer 1: bf16 x bf16 -> f32 accumulate on the MXU; bias + SiLU in f32.
    h1 = jnp.dot(x, w1_ref[...], preferred_element_type=jnp.float32) + b1
    h1 = h1 * jax.nn.sigmoid(h1)                # SiLU (EUP sigmoid + VPU mul)

    # Layer 2.
    h2 = jnp.dot(h1.astype(jnp.bfloat16), w2_ref[...],
                 preferred_element_type=jnp.float32) + b2
    h2 = h2 * jax.nn.sigmoid(h2)

    # Layer 3 (256 -> 1): compute w3 @ h2^T on the MXU so the per-row scores
    # land lane-dense as a (1, TB) row (full-width stores, no sublane->lane
    # relayout, no masked (TB,1) narrow stores). MXU has plenty of slack here.
    score = jnp.einsum("oh,bh->ob", w3_ref[...], h2.astype(jnp.bfloat16),
                       preferred_element_type=jnp.float32) + b3   # (1, TB)

    o_ref[...] = score.reshape(o_ref.shape).astype(o_ref.dtype)   # (1, 1, TB)


def prepare_params(params):
    """One-time cast/reshape of the (in, out)-layout f32 params to the kernel's
    layout (bf16 weights for the MXU, f32 biases, w3 as a lane-dense row).
    Call once and cache; do NOT redo this every forward call."""
    w1, b1, w2, b2, w3, b3 = params
    H2, OUT = w3.shape
    assert OUT == 1, "Discriminator head is expected to have a single output"
    return (
        w1.astype(jnp.bfloat16),                      # (D,  H1)
        b1.reshape(1, -1).astype(jnp.float32),        # (1,  H1)
        w2.astype(jnp.bfloat16),                      # (H1, H2)
        b2.reshape(1, -1).astype(jnp.float32),        # (1,  H2)
        w3.reshape(1, H2).astype(jnp.bfloat16),       # (1,  H2) lane row
        b3.reshape(1, -1).astype(jnp.float32),        # (1,  1)
    )


def discriminator_forward(img, prepared_params, *, max_batch_tile=512):
    """img: (B, C, H, W) float32. prepared_params: output of prepare_params().
    Returns (B, 1) float32 scores."""
    w1b, b1f, w2b, b2f, w3row, b3f = prepared_params
    B = img.shape[0]
    x = img.reshape(B, -1)                  # row-major flatten == torch .view(B, -1)
    D = x.shape[1]
    H1 = w1b.shape[1]
    H2 = w2b.shape[1]
    assert w1b.shape[0] == D, f"in_features mismatch: {w1b.shape[0]} vs {D}"

    TB = _pick_batch_tile(B, max_batch_tile)
    num_tiles = pl.cdiv(B, TB)

    const = lambda shape: pl.BlockSpec(shape, lambda i: (0, 0))

    # Right-size the VMEM limit from the actual resident set (x tile + resident
    # weights, default double-buffered, + f32/bf16 activation temporaries).
    vmem_est = (
        2 * TB * D * 4
        + 2 * (w1b.size + w2b.size + w3row.size) * 2
        + 2 * (b1f.size + b2f.size + b3f.size) * 4
        + 2 * TB * 4
        + TB * (H1 + H2) * 8
    )
    vmem_limit = int(min(64 * 1024 * 1024, max(16 * 1024 * 1024, 2 * vmem_est)))

    flops = 2 * num_tiles * TB * (D * H1 + H1 * H2 + H2 * 1)
    transcendentals = num_tiles * TB * (H1 + H2)
    bytes_accessed = (
        x.size * 4
        + (w1b.size + w2b.size + w3row.size) * 2
        + (b1f.size + b2f.size + b3f.size) * 4
        + num_tiles * TB * 4
    )

    out = pl.pallas_call(
        discriminator_kernel,
        out_shape=jax.ShapeDtypeStruct((num_tiles, 1, TB), jnp.float32),
        grid=(num_tiles,),
        in_specs=[
            pl.BlockSpec((TB, D), lambda i: (i, 0)),   # x: batch-tiled, pipelined, f32
            const((D, H1)),                            # w1 (VMEM-resident across steps)
            const((1, H1)),                            # b1
            const((H1, H2)),                           # w2
            const((1, H2)),                            # b2
            const((1, H2)),                            # w3 as a lane-dense row
            const((1, 1)),                             # b3
        ],
        # Lane-dense output: one (1, TB) score row per grid step.
        out_specs=pl.BlockSpec((1, 1, TB), lambda i: (i, 0, 0)),
        compiler_params=pltpu.CompilerParams(
            dimension_semantics=("parallel",),         # v7x: shard batch tiles over 2 TCs
            vmem_limit_bytes=vmem_limit,
        ),
        cost_estimate=pl.CostEstimate(
            flops=flops,
            transcendentals=transcendentals,
            bytes_accessed=bytes_accessed,
        ),
    )(x, w1b, b1f, w2b, b2f, w3row, b3f)

    # (num_tiles, 1, TB) -> (B, 1); the ragged tail rows (if any) are discarded.
    return out.reshape(-1)[:B].reshape(B, 1)


def init_params(key, in_features, h1=512, h2=256, out=1):
    """Deterministic synthetic parameters, stored (in_features, out_features).
    (PyTorch nn.Linear weights are (out, in) and must be transposed to match.)"""
    k1, k2, k3, k4, k5, k6 = jax.random.split(key, 6)
    w1 = jax.random.normal(k1, (in_features, h1), jnp.float32) * 0.02
    b1 = jax.random.normal(k2, (1, h1), jnp.float32) * 0.01
    w2 = jax.random.normal(k3, (h1, h2), jnp.float32) * 0.02
    b2 = jax.random.normal(k4, (1, h2), jnp.float32) * 0.01
    w3 = jax.random.normal(k5, (h2, out), jnp.float32) * 0.02
    b3 = jax.random.normal(k6, (1, out), jnp.float32) * 0.01
    return (w1, b1, w2, b2, w3, b3)


def reference_forward(img, params):
    """Pure-JAX reference mirroring the kernel numerics (bf16 matmul inputs,
    f32 accumulate / bias / SiLU), matching the PyTorch module semantics."""
    w1, b1, w2, b2, w3, b3 = params
    x = img.reshape(img.shape[0], -1).astype(jnp.bfloat16)
    h1 = jax.nn.silu(jnp.dot(x, w1.astype(jnp.bfloat16),
                             preferred_element_type=jnp.float32) + b1.reshape(1, -1))
    h2 = jax.nn.silu(jnp.dot(h1.astype(jnp.bfloat16), w2.astype(jnp.bfloat16),
                             preferred_element_type=jnp.float32) + b2.reshape(1, -1))
    return jnp.dot(h2.astype(jnp.bfloat16), w3.astype(jnp.bfloat16),
                   preferred_element_type=jnp.float32) + b3.reshape(1, -1)


if __name__ == "__main__":
    key = jax.random.PRNGKey(0)
    k_img, k_par = jax.random.split(key)

    # img_shape = (4, 16, 16) -> 1024 input features, batch = 2
    B, C, Himg, Wimg = 2, 4, 16, 16
    img = jax.random.normal(k_img, (B, C, Himg, Wimg), jnp.float32)

    params = init_params(k_par, C * Himg * Wimg)
    prepared = prepare_params(params)          # bf16 weight cast done once, cached

    score = discriminator_forward(img, prepared)
    score = jax.block_until_ready(score)

    ref = reference_forward(img, params)
    assert score.shape == (B, 1), f"bad output shape {score.shape}"
    assert jnp.allclose(score, ref, atol=2e-3, rtol=2e-3), "mismatch vs reference"

    print("KERNEL_OK")
</pallas_src>

<mosaic_0001>
module attributes {stable_mosaic.version = 11 : i64} {
  func.func @discriminator_kernel(%arg0: i32, %arg1: memref<16x1024xf32, #tpu.memory_space<vmem>>, %arg2: memref<1024x512xbf16, #tpu.memory_space<vmem>>, %arg3: memref<1x512xf32, #tpu.memory_space<vmem>>, %arg4: memref<512x256xbf16, #tpu.memory_space<vmem>>, %arg5: memref<1x256xf32, #tpu.memory_space<vmem>>, %arg6: memref<1x256xbf16, #tpu.memory_space<vmem>>, %arg7: memref<1x1xf32, #tpu.memory_space<vmem>>, %arg8: memref<1x1x16xf32, #tpu.memory_space<vmem>>) attributes {dimension_semantics = [#tpu.dimension_semantics<parallel>], iteration_bounds = array<i64: 1>, scalar_prefetch = 0 : i64, scratch_operands = 0 : i64, tpu.core_type = #tpu.core_type<tc>, window_params = [{transform_indices = @transform_0, window_bounds = array<i64: 16, 1024>}, {pipeline_mode = #tpu.pipeline_mode<synchronous>, transform_indices = @transform_1, window_bounds = array<i64: 1024, 512>}, {pipeline_mode = #tpu.pipeline_mode<synchronous>, transform_indices = @transform_2, window_bounds = array<i64: 1, 512>}, {pipeline_mode = #tpu.pipeline_mode<synchronous>, transform_indices = @transform_3, window_bounds = array<i64: 512, 256>}, {pipeline_mode = #tpu.pipeline_mode<synchronous>, transform_indices = @transform_4, window_bounds = array<i64: 1, 256>}, {pipeline_mode = #tpu.pipeline_mode<synchronous>, transform_indices = @transform_5, window_bounds = array<i64: 1, 256>}, {pipeline_mode = #tpu.pipeline_mode<synchronous>, transform_indices = @transform_6, window_bounds = array<i64: 1, 1>}, {transform_indices = @transform_7, window_bounds = array<i64: 1, 1, 16>}]} {
    %c0 = arith.constant 0 : index
    %c0_0 = arith.constant 0 : index
    %0 = vector.load %arg3[%c0, %c0_0] : memref<1x512xf32, #tpu.memory_space<vmem>>, vector<1x512xf32>
    %c0_1 = arith.constant 0 : index
    %c0_2 = arith.constant 0 : index
    %1 = vector.load %arg5[%c0_1, %c0_2] : memref<1x256xf32, #tpu.memory_space<vmem>>, vector<1x256xf32>
    %c0_3 = arith.constant 0 : index
    %c0_4 = arith.constant 0 : index
    %2 = vector.load %arg7[%c0_3, %c0_4] : memref<1x1xf32, #tpu.memory_space<vmem>>, vector<1x1xf32>
    %c0_5 = arith.constant 0 : index
    %c0_6 = arith.constant 0 : index
    %3 = vector.load %arg1[%c0_5, %c0_6] : memref<16x1024xf32, #tpu.memory_space<vmem>>, vector<16x1024xf32>
    %4 = arith.truncf %3 : vector<16x1024xf32> to vector<16x1024xbf16>
    %c0_7 = arith.constant 0 : index
    %c0_8 = arith.constant 0 : index
    %5 = vector.load %arg2[%c0_7, %c0_8] : memref<1024x512xbf16, #tpu.memory_space<vmem>>, vector<1024x512xbf16>
    %cst = arith.constant dense<0.000000e+00> : vector<16x512xf32>
    %6 = tpu.matmul %4, %5, %cst {dimension_numbers = #tpu.dot_dimension_numbers<[1], [0], [0], [1], [0, 0, 1, 1], [], []>} : vector<16x1024xbf16>, vector<1024x512xbf16>, vector<16x512xf32> -> vector<16x512xf32>
    %7 = vector.broadcast %0 : vector<1x512xf32> to vector<16x512xf32>
    %8 = arith.addf %6, %7 : vector<16x512xf32>
    %9 = arith.negf %8 : vector<16x512xf32>
    %10 = math.exp %9 : vector<16x512xf32>
    %cst_9 = arith.constant 1.000000e+00 : f32
    %11 = vector.broadcast %cst_9 : f32 to vector<16x512xf32>
    %12 = arith.addf %11, %10 : vector<16x512xf32>
    %13 = arith.divf %11, %12 : vector<16x512xf32>
    %14 = arith.mulf %8, %13 : vector<16x512xf32>
    %15 = arith.truncf %14 : vector<16x512xf32> to vector<16x512xbf16>
    %c0_10 = arith.constant 0 : index
    %c0_11 = arith.constant 0 : index
    %16 = vector.load %arg4[%c0_10, %c0_11] : memref<512x256xbf16, #tpu.memory_space<vmem>>, vector<512x256xbf16>
    %cst_12 = arith.constant dense<0.000000e+00> : vector<16x256xf32>
    %17 = tpu.matmul %15, %16, %cst_12 {dimension_numbers = #tpu.dot_dimension_numbers<[1], [0], [0], [1], [0, 0, 1, 1], [], []>} : vector<16x512xbf16>, vector<512x256xbf16>, vector<16x256xf32> -> vector<16x256xf32>
    %18 = vector.broadcast %1 : vector<1x256xf32> to vector<16x256xf32>
    %19 = arith.addf %17, %18 : vector<16x256xf32>
    %20 = arith.negf %19 : vector<16x256xf32>
    %21 = math.exp %20 : vector<16x256xf32>
    %cst_13 = arith.constant 1.000000e+00 : f32
    %22 = vector.broadcast %cst_13 : f32 to vector<16x256xf32>
    %23 = arith.addf %22, %21 : vector<16x256xf32>
    %24 = arith.divf %22, %23 : vector<16x256xf32>
    %25 = arith.mulf %19, %24 : vector<16x256xf32>
    %c0_14 = arith.constant 0 : index
    %c0_15 = arith.constant 0 : index
    %26 = vector.load %arg6[%c0_14, %c0_15] : memref<1x256xbf16, #tpu.memory_space<vmem>>, vector<1x256xbf16>
    %27 = arith.truncf %25 : vector<16x256xf32> to vector<16x256xbf16>
    "tpu.trace_start"() <{level = 10 : i32, message = "oh,bh->ob"}> : () -> ()
    %cst_16 = arith.constant dense<0.000000e+00> : vector<1x16xf32>
    %28 = tpu.matmul %26, %27, %cst_16 {dimension_numbers = #tpu.dot_dimension_numbers<[1], [1], [0], [0], [0, 0, 1, 0], [], []>} : vector<1x256xbf16>, vector<16x256xbf16>, vector<1x16xf32> -> vector<1x16xf32>
    "tpu.trace_stop"() : () -> ()
    %29 = vector.broadcast %2 : vector<1x1xf32> to vector<1x16xf32>
    %30 = arith.addf %28, %29 : vector<1x16xf32>
    %31 = vector.shape_cast %30 : vector<1x16xf32> to vector<1x1x16xf32>
    %c0_17 = arith.constant 0 : index
    %c0_18 = arith.constant 0 : index
    %c0_19 = arith.constant 0 : index
    %32 = vector.load %arg8[%c0_17, %c0_18, %c0_19] : memref<1x1x16xf32, #tpu.memory_space<vmem>>, vector<1x1x16xf32>
    tpu.vector_store %arg8[%c0_17, %c0_18, %c0_19], %31 {strides = array<i32>} : memref<1x1x16xf32, #tpu.memory_space<vmem>>, vector<1x1x16xf32>,
    return
  }
  func.func @transform_0(%arg0: i32) -> (i32, i32) {
    %c0_i32 = arith.constant 0 : i32
    %c0_i32_0 = arith.constant 0 : i32
    return %arg0, %c0_i32 : i32, i32
  }
  func.func @transform_1(%arg0: i32) -> (i32, i32) {
    %c0_i32 = arith.constant 0 : i32
    %c0_i32_0 = arith.constant 0 : i32
    %c0_i32_1 = arith.constant 0 : i32
    return %c0_i32, %c0_i32_0 : i32, i32
  }
  func.func @transform_2(%arg0: i32) -> (i32, i32) {
    %c0_i32 = arith.constant 0 : i32
    %c0_i32_0 = arith.constant 0 : i32
    %c0_i32_1 = arith.constant 0 : i32
    return %c0_i32, %c0_i32_0 : i32, i32
  }
  func.func @transform_3(%arg0: i32) -> (i32, i32) {
    %c0_i32 = arith.constant 0 : i32
    %c0_i32_0 = arith.constant 0 : i32
    %c0_i32_1 = arith.constant 0 : i32
    return %c0_i32, %c0_i32_0 : i32, i32
  }
  func.func @transform_4(%arg0: i32) -> (i32, i32) {
    %c0_i32 = arith.constant 0 : i32
    %c0_i32_0 = arith.constant 0 : i32
    %c0_i32_1 = arith.constant 0 : i32
    return %c0_i32, %c0_i32_0 : i32, i32
  }
  func.func @transform_5(%arg0: i32) -> (i32, i32) {
    %c0_i32 = arith.constant 0 : i32
    %c0_i32_0 = arith.constant 0 : i32
    %c0_i32_1 = arith.constant 0 : i32
    return %c0_i32, %c0_i32_0 : i32, i32
  }
  func.func @transform_6(%arg0: i32) -> (i32, i32) {
    %c0_i32 = arith.constant 0 : i32
    %c0_i32_0 = arith.constant 0 : i32
    %c0_i32_1 = arith.constant 0 : i32
    return %c0_i32, %c0_i32_0 : i32, i32
  }
  func.func @transform_7(%arg0: i32) -> (i32, i32, i32) {
    %c0_i32 = arith.constant 0 : i32
    %c0_i32_0 = arith.constant 0 : i32
    %c0_i32_1 = arith.constant 0 : i32
    return %arg0, %c0_i32, %c0_i32_0 : i32, i32, i32
  }
}

</mosaic_0001>

<bundles_post_ra>
// kernel: tpu_custom_call.1
= control target key start
LH: loop header
LB: loop body
LE: loop exit
PB: predicated region body
PF: predicated region fallthrough
CT: control target
= control target key end

     0   :  { %s4010_s0 = inlined_call_operand.hbm [shape: f32[2,1024], index: 0, kind: input, shape index: {}]   ;;  %s4011_s1 = inlined_call_operand.hbm [shape: bf16[1024,512], index: 1, kind: input, shape index: {}]   ;;  %s4012_s2 = inlined_call_operand.vmem [shape: f32[1,512], index: 2, kind: input, shape index: {}]   ;;  %s4013_s3 = inlined_call_operand.hbm [shape: bf16[512,256], index: 3, kind: input, shape index: {}]   ;;  %s4014_s4 = inlined_call_operand.vmem [shape: f32[1,256], index: 4, kind: input, shape index: {}]   ;;  %s4015_s5 = inlined_call_operand.vmem [shape: bf16[1,256], index: 5, kind: input, shape index: {}]   ;;  %s4016_s6 = inlined_call_operand.<no memory space> [shape: f32[1,1], index: 6, kind: input, shape index: {}]   ;;  %s4017_s7 = inlined_call_operand.hbm [shape: f32[1,1,16], index: 7, kind: output, shape index: {}]  }
   0x1   :  { %v12_v0 = vstv %s4016_s6 }
   0x2   :  { %13 = vst [vmem:[#allocation2] sm:$0x1] %v12_v0 }
   0x3   :  { %14 = vsyncpa [#allocation4], 0 }
   0x4   :  { %15 = vsyncpa [#allocation7], 0 }
   0x5   :  { %16 = vsyncpa [#allocation5], 0 }
   0x6   :  { %21 = vsyncadd [#allocation4], 1792  ;;  %s3822_s26 = smov [#allocation6]   ;;  %s3823_s28 = smov [#allocation3]  }
   0x7   :  { %s34_s27 = sshll.u32 %s3822_s26, 4  ;;  %s22_s29 = sshll.u32 %s3823_s28, 4  ;;  %s35_s27 = int_to_ptr.vmem [resolvable:$true] %s34_s27  ;;  %s23_s29 = int_to_ptr.vmem [resolvable:$true] %s22_s29 }
   0x8   :  { %s3744_s30 = scalar_lea.vmem %s35_s27, 32768  ;;  %p3749_p1 = scmp.lt.s32.totalorder %s35_s27, %s35_s27 }
   0x9   :  { %p3745_p0 = scmp.ne.s32.totalorder %s35_s27, %s3744_s30  ;;  %p3750_p2 = scmp.lt.s32.totalorder %s3744_s30, %s3744_s30 }
   0xb   :  { %p3751_p3 = por %p3750_p2, %p3749_p1 }
   0xd   :  { %p3752_p4 = pnand %p3751_p3, %p3745_p0 }
   0xf   :  { %3755 = shalt.err (!%p3752_p4)
}
  0x10   :  { %s3824_s8 = smov 256   ;;  %s3825_s6 = smov 16  }
  0x11   :  { %40 = dma.hbm_to_vmem [thread:$0]  %s4011_s1, 32768, %s35_s27, [#allocation7], %s3824_s8, %s3824_s8, %s3825_s6  }
  0x12   :  { %s3764_s11 = scalar_lea.vmem %s23_s29, 256  ;;  %s3768_s12 = scalar_lea.vmem %s23_s29, 2048 }
  0x13   :  { %p3765_p5 = scmp.ne.s32.totalorder %s23_s29, %s3764_s11  ;;  %p3769_p6 = scmp.lt.s32.totalorder %s23_s29, %s23_s29 }
  0x14   :  { %p3770_p7 = scmp.lt.s32.totalorder %s3768_s12, %s3764_s11 }
  0x16   :  { %p3771_p8 = por %p3770_p7, %p3769_p6 }
  0x18   :  { %p3772_p9 = pnand %p3771_p8, %p3765_p5 }
  0x1a   :  { %3775 = shalt.err (!%p3772_p9)
}
  0x1b   :  { %28 = dma.hbm_to_vmem [thread:$0]  %s4010_s0, 256, %s23_s29, [#allocation4], %s3824_s8, %s3824_s8, %s3825_s6  }
  0x1c   :  { %s3826_s15 = smov [#allocation8]  }
  0x1d   :  { %s48_s16 = sshll.u32 %s3826_s15, 4  ;;  %s49_s16 = int_to_ptr.vmem [resolvable:$true] %s48_s16 }
  0x1e   :  { %s3784_s17 = scalar_lea.vmem %s49_s16, 8192  ;;  %p3789_p11 = scmp.lt.s32.totalorder %s49_s16, %s49_s16 }
  0x1f   :  { %p3785_p10 = scmp.ne.s32.totalorder %s49_s16, %s3784_s17  ;;  %p3790_p12 = scmp.lt.s32.totalorder %s3784_s17, %s3784_s17 }
  0x21   :  { %p3791_p13 = por %p3790_p12, %p3789_p11 }
  0x23   :  { %p3792_p0 = pnand %p3791_p13, %p3785_p10 }
  0x25   :  { %3795 = shalt.err (!%p3792_p0)
}
  0x26   :  { %s3827_s1 = smov 128   ;;  %s3828_s18 = smov 8  }
  0x27   :  { %54 = dma.hbm_to_vmem [thread:$0]  %s4013_s3, 8192, %s49_s16, [#allocation7], %s3827_s1, %s3827_s1, %s3828_s18  }
  0x28   :  { %3816 = dma.done.wait [#allocation4], 2048  }
  0x29   :  { %3817 = vsyncadd [#allocation4], 4294965248 }
  0x2a   :  { %3818 = dma.done.wait [#allocation7], 40960  }
  0x2b   :  { %3819 = vsyncadd [#allocation7], 4294926336  ;;  %v3184_v1 = vld [vmem:[#allocation6 + $0xe4] ss:$16 sps:$4 sm:$0xff]   ;;  %v3188_v3 = vld [vmem:[#allocation6 + $0xe0] ss:$16 sps:$4 sm:$0xff]   ;;  %v113_v42 = vlaneseq }
  0x2c   :  { %v3186_v2 = vld [vmem:[#allocation6 + $0x2e4] ss:$16 sps:$4 sm:$0xff]   ;;  %1831 = vmatprep.subr.bf16.mxu0 %v3184_v1  ;;  %v3189_v4 = vld [vmem:[#allocation6 + $0x2e0] ss:$16 sps:$4 sm:$0xff]   ;;  %v3829_v40 = vmov 1983009808  }
  0x2d   :  { %1874 = vmatprep.subr.bf16.mxu1 %v3186_v2  ;;  %v3190_v5 = vld [vmem:[#allocation6 + $0xc4] ss:$16 sps:$4 sm:$0xff]   ;;  %1832 = vmatpush1.bf16.msra.mxu0 %v3188_v3  ;;  %v3194_v7 = vld [vmem:[#allocation6 + $0xc0] ss:$16 sps:$4 sm:$0xff]   ;;  %v111_v41 = vunpack.c.l.s4 %v3829_v40  ;;  %v3885_v49 = vshrl.u32 %v113_v42, 7  ;;  %vm2821_vm0 = vcmask 122880  }
  0x2e   :  { %1875 = vmatpush1.bf16.msra.mxu1 %v3189_v4  ;;  %v3192_v6 = vld [vmem:[#allocation6 + $0x2c4] ss:$16 sps:$4 sm:$0xff]   ;;  %1833 = vmatprep.subr.bf16.mxu0 %v3190_v5  ;;  %v3195_v8 = vld [vmem:[#allocation6 + $0x2c0] ss:$16 sps:$4 sm:$0xff]  }
  0x2f   :  { %1876 = vmatprep.subr.bf16.mxu1 %v3192_v6  ;;  %v3196_v9 = vld [vmem:[#allocation6 + $0xa4] ss:$16 sps:$4 sm:$0xff]   ;;  %v3200_v11 = vld [vmem:[#allocation6 + $0xa0] ss:$16 sps:$4 sm:$0xff]   ;;  %v112_v48 = vunpack.c.0.s8 %v111_v41 }
  0x30   :  { %v3198_v10 = vld [vmem:[#allocation6 + $0x2a4] ss:$16 sps:$4 sm:$0xff]   ;;  %v3201_v12 = vld [vmem:[#allocation6 + $0x2a0] ss:$16 sps:$4 sm:$0xff]  }
  0x31   :  { %1834 = vmatpush1.bf16.msra.mxu0 %v3194_v7  ;;  %v3202_v13 = vld [vmem:[#allocation6 + $0x84] ss:$16 sps:$4 sm:$0xff]   ;;  %v3206_v15 = vld [vmem:[#allocation6 + $0x80] ss:$16 sps:$4 sm:$0xff]   ;;  %v3888_v56 = vsub.s32 %v112_v48, %v3885_v49 }
  0x32   :  { %1877 = vmatpush1.bf16.msra.mxu1 %v3195_v8  ;;  %1835 = vmatprep.subr.bf16.mxu0 %v3196_v9  ;;  %v3204_v14 = vld [vmem:[#allocation6 + $0x284] ss:$16 sps:$4 sm:$0xff]   ;;  %v3207_v16 = vld [vmem:[#allocation6 + $0x280] ss:$16 sps:$4 sm:$0xff]  }
  0x33   :  { %1878 = vmatprep.subr.bf16.mxu1 %v3198_v10  ;;  %v3208_v17 = vld [vmem:[#allocation6 + $0x64] ss:$16 sps:$4 sm:$0xff]   ;;  %v3212_v19 = vld [vmem:[#allocation6 + $0x60] ss:$16 sps:$4 sm:$0xff]  }
  0x34   :  { %v3210_v18 = vld [vmem:[#allocation6 + $0x264] ss:$16 sps:$4 sm:$0xff]   ;;  %v3213_v20 = vld [vmem:[#allocation6 + $0x260] ss:$16 sps:$4 sm:$0xff]  }
  0x35   :  { %1836 = vmatpush1.bf16.msra.mxu0 %v3200_v11  ;;  %v3214_v21 = vld [vmem:[#allocation6 + $0x44] ss:$16 sps:$4 sm:$0xff]   ;;  %v3218_v23 = vld [vmem:[#allocation6 + $0x40] ss:$16 sps:$4 sm:$0xff]  }
  0x36   :  { %1879 = vmatpush1.bf16.msra.mxu1 %v3201_v12  ;;  %1837 = vmatprep.subr.bf16.mxu0 %v3202_v13  ;;  %v3216_v22 = vld [vmem:[#allocation6 + $0x244] ss:$16 sps:$4 sm:$0xff]   ;;  %v3219_v24 = vld [vmem:[#allocation6 + $0x240] ss:$16 sps:$4 sm:$0xff]  }
  0x37   :  { %1880 = vmatprep.subr.bf16.mxu1 %v3204_v14  ;;  %v3220_v25 = vld [vmem:[#allocation6 + $0x24] ss:$16 sps:$4 sm:$0xff]   ;;  %v3224_v27 = vld [vmem:[#allocation6 + $0x20] ss:$16 sps:$4 sm:$0xff]  }
  0x38   :  { %v3222_v26 = vld [vmem:[#allocation6 + $0x224] ss:$16 sps:$4 sm:$0xff]   ;;  %v3225_v28 = vld [vmem:[#allocation6 + $0x220] ss:$16 sps:$4 sm:$0xff]  }
  0x39   :  { %1838 = vmatpush1.bf16.msra.mxu0 %v3206_v15  ;;  %v3226_v29 = vld [vmem:[#allocation6 + $0x4] ss:$16 sps:$4 sm:$0xff]   ;;  %v3230_v31 = vld [vmem:[#allocation6] ss:$16 sps:$4 sm:$0xff]  }
  0x3a   :  { %1881 = vmatpush1.bf16.msra.mxu1 %v3207_v16  ;;  %1839 = vmatprep.subr.bf16.mxu0 %v3208_v17  ;;  %v3228_v30 = vld [vmem:[#allocation6 + $0x204] ss:$16 sps:$4 sm:$0xff]   ;;  %v3231_v32 = vld [vmem:[#allocation6 + $0x200] ss:$16 sps:$4 sm:$0xff]  }
  0x3b   :  { %1882 = vmatprep.subr.bf16.mxu1 %v3210_v18  ;;  %v3232_v33 = vld [vmem:[#allocation6 + $0x1e4] ss:$16 sps:$4 sm:$0xff]   ;;  %v3236_v35 = vld [vmem:[#allocation6 + $0x1e0] ss:$16 sps:$4 sm:$0xff]  }
  0x3c   :  { %v3234_v34 = vld [vmem:[#allocation6 + $0x3e4] ss:$16 sps:$4 sm:$0xff]   ;;  %v3237_v36 = vld [vmem:[#allocation6 + $0x3e0] ss:$16 sps:$4 sm:$0xff]  }
  0x3d   :  { %1840 = vmatpush1.bf16.msra.mxu0 %v3212_v19  ;;  %v3238_v37 = vld [vmem:[#allocation6 + $0x1c4] ss:$16 sps:$4 sm:$0xff]   ;;  %v3242_v39 = vld [vmem:[#allocation6 + $0x1c0] ss:$16 sps:$4 sm:$0xff]  }
  0x3e   :  { %1883 = vmatpush1.bf16.msra.mxu1 %v3213_v20  ;;  %1841 = vmatprep.subr.bf16.mxu0 %v3214_v21  ;;  %v3240_v38 = vld [vmem:[#allocation6 + $0x3c4] ss:$16 sps:$4 sm:$0xff]   ;;  %v3243_v43 = vld [vmem:[#allocation6 + $0x3c0] ss:$16 sps:$4 sm:$0xff]  }
  0x3f   :  { %1884 = vmatprep.subr.bf16.mxu1 %v3216_v22  ;;  %v3244_v44 = vld [vmem:[#allocation6 + $0x1a4] ss:$16 sps:$4 sm:$0xff]   ;;  %v3248_v46 = vld [vmem:[#allocation6 + $0x1a0] ss:$16 sps:$4 sm:$0xff]  }
  0x40   :  { %v3246_v45 = vld [vmem:[#allocation6 + $0x3a4] ss:$16 sps:$4 sm:$0xff]   ;;  %v3249_v47 = vld [vmem:[#allocation6 + $0x3a0] ss:$16 sps:$4 sm:$0xff]  }
  0x41   :  { %1842 = vmatpush1.bf16.msra.mxu0 %v3218_v23  ;;  %v3250_v50 = vld [vmem:[#allocation6 + $0x184] ss:$16 sps:$4 sm:$0xff]   ;;  %v3254_v52 = vld [vmem:[#allocation6 + $0x180] ss:$16 sps:$4 sm:$0xff]  }
  0x42   :  { %1885 = vmatpush1.bf16.msra.mxu1 %v3219_v24  ;;  %1843 = vmatprep.subr.bf16.mxu0 %v3220_v25  ;;  %v3252_v51 = vld [vmem:[#allocation6 + $0x384] ss:$16 sps:$4 sm:$0xff]   ;;  %v3255_v53 = vld [vmem:[#allocation6 + $0x380] ss:$16 sps:$4 sm:$0xff]  }
  0x43   :  { %1886 = vmatprep.subr.bf16.mxu1 %v3222_v26  ;;  %v3256_v54 = vld [vmem:[#allocation6 + $0x164] ss:$16 sps:$4 sm:$0xff]   ;;  %v3280_v57 = vld [vmem:[#allocation3] ss:$16 sps:$4 sm:$0xff]  }
  0x44   :  { %v3258_v55 = vld [vmem:[#allocation6 + $0x364] ss:$16 sps:$4 sm:$0xff]   ;;  %v3282_v58 = vld [vmem:[#allocation3 + $0x20] ss:$16 sps:$4 sm:$0xff]   ;;  %v116_v0 = vrot.slane %v3280_v57, %v3888_v56 }
  0x45   :  { %1844 = vmatpush1.bf16.msra.mxu0 %v3224_v27  ;;  %v3260_v59 = vld [vmem:[#allocation6 + $0x160] ss:$16 sps:$4 sm:$0xff]   ;;  %v3288_v63 = vld [vmem:[#allocation3 + $0x4] ss:$16 sps:$4 sm:$0xff]   ;;  %v130_v1 = vrot.slane %v3282_v58, %v3888_v56 }
  0x46   :  { %1887 = vmatpush1.bf16.msra.mxu1 %v3225_v28  ;;  %1845 = vmatprep.subr.bf16.mxu0 %v3226_v29  ;;  %v3261_v60 = vld [vmem:[#allocation6 + $0x360] ss:$16 sps:$4 sm:$0xff]   ;;  %v3289_v2 = vld [vmem:[#allocation3 + $0x24] ss:$16 sps:$4 sm:$0xff]   ;;  %v123_v8 = vrot.slane %v3288_v63, %v3888_v56 }
  0x47   :  { %1888 = vmatprep.subr.bf16.mxu1 %v3228_v30  ;;  %v3284_v61 = vld [vmem:[#allocation3 + $0x40] ss:$16 sps:$4 sm:$0xff]   ;;  %v3290_v3 = vld [vmem:[#allocation3 + $0x44] ss:$16 sps:$4 sm:$0xff]   ;;  %v139_v10 = vcombine.high %v116_v0, %v130_v1  ;;  %v137_v11 = vrot.slane %v3289_v2, %v3888_v56  ;;  %v138_v29 = vcombine.low %v116_v0, %v130_v1 }
  0x48   :  { %v3286_v62 = vld [vmem:[#allocation3 + $0x60] ss:$16 sps:$4 sm:$0xff]   ;;  %v3291_v4 = vld [vmem:[#allocation3 + $0x64] ss:$16 sps:$4 sm:$0xff]   ;;  %v188_v6 = vrot.slane %v3284_v61, %v3888_v56  ;;  %v195_v12 = vrot.slane %v3290_v3, %v3888_v56 }
  0x49   :  { %1846 = vmatpush1.bf16.msra.mxu0 %v3230_v31  ;;  %v3262_v5 = vld [vmem:[#allocation6 + $0x144] ss:$16 sps:$4 sm:$0xff]   ;;  %v202_v7 = vrot.slane %v3286_v62, %v3888_v56  ;;  %v209_v14 = vrot.slane %v3291_v4, %v3888_v56  ;;  %v3266_v15 = vld [vmem:[#allocation6 + $0x140] ss:$16 sps:$4 sm:$0xff]   ;;  %v141_v17 = vcombine.high %v123_v8, %v137_v11  ;;  %v140_v31 = vcombine.low %v123_v8, %v137_v11  ;;  %v3390_v8 = vld [vmem:[#allocation3 + $0x28] ss:$16 sps:$4 sm:$0xff]  }
  0x4a   :  { %1889 = vmatpush1.bf16.msra.mxu1 %v3231_v32  ;;  %1847 = vmatprep.subr.bf16.mxu0 %v3232_v33  ;;  %v3264_v9 = vld [vmem:[#allocation6 + $0x344] ss:$16 sps:$4 sm:$0xff]   ;;  %v3267_v16 = vld [vmem:[#allocation6 + $0x340] ss:$16 sps:$4 sm:$0xff]   ;;  %v3392_v11 = vld [vmem:[#allocation3 + $0x48] ss:$16 sps:$4 sm:$0xff]  }
  0x4b   :  { %1890 = vmatprep.subr.bf16.mxu1 %v3234_v34  ;;  %v211_v13 = vcombine.high %v188_v6, %v202_v7  ;;  %v3268_v18 = vld [vmem:[#allocation6 + $0x124] ss:$16 sps:$4 sm:$0xff]   ;;  %v213_v20 = vcombine.high %v195_v12, %v209_v14  ;;  %v3272_v23 = vld [vmem:[#allocation6 + $0x120] ss:$16 sps:$4 sm:$0xff]   ;;  %v210_v30 = vcombine.low %v188_v6, %v202_v7  ;;  %v212_v32 = vcombine.low %v195_v12, %v209_v14  ;;  %v3388_v7 = vld [vmem:[#allocation3 + $0x8] ss:$16 sps:$4 sm:$0xff]  }
  0x4c   :  { %v3270_v21 = vld [vmem:[#allocation6 + $0x324] ss:$16 sps:$4 sm:$0xff]   ;;  %v3273_v24 = vld [vmem:[#allocation6 + $0x320] ss:$16 sps:$4 sm:$0xff]   ;;  %v3394_v12 = vld [vmem:[#allocation3 + $0x68] ss:$16 sps:$4 sm:$0xff]   ;;  %v3911_v14 = vrot.slane %v3388_v7, %v3888_v56 }
  0x4d   :  { %1848 = vmatpush2.bf16.msra.mxu0 %v3236_v35  ;;  %v3898_v19 = vpack.c.bf16 %v211_v13, %v139_v10  ;;  %v3901_v22 = vpack.c.bf16 %v213_v20, %v141_v17  ;;  %v3274_v25 = vld [vmem:[#allocation6 + $0x104] ss:$16 sps:$4 sm:$0xff]   ;;  %v3278_v27 = vld [vmem:[#allocation6 + $0x100] ss:$16 sps:$4 sm:$0xff]   ;;  %v3904_v35 = vpack.c.bf16 %v210_v30, %v138_v29  ;;  %v3396_v13 = vld [vmem:[#allocation3 + $0xc] ss:$16 sps:$4 sm:$0xff]  }
  0x4e   :  { %1891 = vmatpush2.bf16.msra.mxu1 %v3237_v36  ;;  %1849 = vmatprep.subr.bf16.mxu0 %v3238_v37  ;;  %v3276_v26 = vld [vmem:[#allocation6 + $0x304] ss:$16 sps:$4 sm:$0xff]   ;;  %v3279_v28 = vld [vmem:[#allocation6 + $0x300] ss:$16 sps:$4 sm:$0xff]   ;;  %v3906_v36 = vpack.c.bf16 %v212_v32, %v140_v31  ;;  %v3398_v17 = vld [vmem:[#allocation3 + $0x4c] ss:$16 sps:$4 sm:$0xff]  }
  0x4f   :  { %1892 = vmatprep.subr.bf16.mxu1 %v3240_v38  ;;  %1863 = vmatprep.mubr.bf16.mxu0 %v3898_v19  ;;  %v3294_v33 = vld [vmem:[#allocation6 + $0x4e4] ss:$16 sps:$4 sm:$0xff]   ;;  %v3292_v37 = vld [vmem:[#allocation6 + $0x4e0] ss:$16 sps:$4 sm:$0xff]  }
  0x50   :  { %1906 = vmatprep.mubr.bf16.mxu1 %v3901_v22  ;;  %v3297_v34 = vld [vmem:[#allocation6 + $0x6e4] ss:$16 sps:$4 sm:$0xff]   ;;  %v3295_v38 = vld [vmem:[#allocation6 + $0x6e0] ss:$16 sps:$4 sm:$0xff]  }
  0x51   :  { %1850 = vmatpush2.bf16.msra.mxu0 %v3242_v39  ;;  %v3300_v39 = vld [vmem:[#allocation6 + $0x4c4] ss:$16 sps:$4 sm:$0xff]   ;;  %v3298_v41 = vld [vmem:[#allocation6 + $0x4c0] ss:$16 sps:$4 sm:$0xff]  }
  0x52   :  { %1893 = vmatpush2.bf16.msra.mxu1 %v3243_v43  ;;  %1851 = vmatprep.subr.bf16.mxu0 %v3244_v44  ;;  %v3303_v40 = vld [vmem:[#allocation6 + $0x6c4] ss:$16 sps:$4 sm:$0xff]   ;;  %v3301_v42 = vld [vmem:[#allocation6 + $0x6c0] ss:$16 sps:$4 sm:$0xff]  }
  0x53   :  { %1894 = vmatprep.subr.bf16.mxu1 %v3246_v45  ;;  %v3306_v43 = vld [vmem:[#allocation6 + $0x4a4] ss:$16 sps:$4 sm:$0xff]   ;;  %v3304_v45 = vld [vmem:[#allocation6 + $0x4a0] ss:$16 sps:$4 sm:$0xff]  }
  0x54   :  { %v3309_v44 = vld [vmem:[#allocation6 + $0x6a4] ss:$16 sps:$4 sm:$0xff]   ;;  %v3328_v63 = vld [vmem:[#allocation6 + $0x420] ss:$16 sps:$4 sm:$0xff]  }
  0x55   :  { %1852 = vmatpush2.bf16.msra.mxu0 %v3248_v46  ;;  %v3307_v46 = vld [vmem:[#allocation6 + $0x6a0] ss:$16 sps:$4 sm:$0xff]   ;;  %v3315_v48 = vld [vmem:[#allocation6 + $0x684] ss:$16 sps:$4 sm:$0xff]  }
  0x56   :  { %1895 = vmatpush2.bf16.msra.mxu1 %v3249_v47  ;;  %1853 = vmatprep.subr.bf16.mxu0 %v3250_v50  ;;  %v3312_v47 = vld [vmem:[#allocation6 + $0x484] ss:$16 sps:$4 sm:$0xff]   ;;  %v3310_v50 = vld [vmem:[#allocation6 + $0x480] ss:$16 sps:$4 sm:$0xff]  }
  0x57   :  { %1896 = vmatprep.subr.bf16.mxu1 %v3252_v51  ;;  %v3313_v51 = vld [vmem:[#allocation6 + $0x680] ss:$16 sps:$4 sm:$0xff]   ;;  %v3324_v57 = vld [vmem:[#allocation6 + $0x444] ss:$16 sps:$4 sm:$0xff]  }
  0x58   :  { %v3327_v58 = vld [vmem:[#allocation6 + $0x644] ss:$16 sps:$4 sm:$0xff]   ;;  %v3331_v0 = vld [vmem:[#allocation6 + $0x620] ss:$16 sps:$4 sm:$0xff]  }
  0x59   :  { %1854 = vmatpush2.bf16.msra.mxu0 %v3254_v52  ;;  %v3318_v52 = vld [vmem:[#allocation6 + $0x464] ss:$16 sps:$4 sm:$0xff]   ;;  %v3334_v3 = vld [vmem:[#allocation6 + $0x400] ss:$16 sps:$4 sm:$0xff]  }
  0x5a   :  { %1897 = vmatpush2.bf16.msra.mxu1 %v3255_v53  ;;  %1855 = vmatprep.subr.bf16.mxu0 %v3256_v54  ;;  %v3321_v53 = vld [vmem:[#allocation6 + $0x664] ss:$16 sps:$4 sm:$0xff]   ;;  %v3316_v54 = vld [vmem:[#allocation6 + $0x460] ss:$16 sps:$4 sm:$0xff]  }
  0x5b   :  { %1898 = vmatprep.subr.bf16.mxu1 %v3258_v55  ;;  %v3319_v55 = vld [vmem:[#allocation6 + $0x660] ss:$16 sps:$4 sm:$0xff]   ;;  %v3330_v61 = vld [vmem:[#allocation6 + $0x424] ss:$16 sps:$4 sm:$0xff]  }
  0x5c   :  { %v3333_v62 = vld [vmem:[#allocation6 + $0x624] ss:$16 sps:$4 sm:$0xff]   ;;  %v3337_v4 = vld [vmem:[#allocation6 + $0x600] ss:$16 sps:$4 sm:$0xff]  }
  0x5d   :  { %1856 = vmatpush2.bf16.msra.mxu0 %v3260_v59  ;;  %v3322_v59 = vld [vmem:[#allocation6 + $0x440] ss:$16 sps:$4 sm:$0xff]   ;;  %v3336_v1 = vld [vmem:[#allocation6 + $0x404] ss:$16 sps:$4 sm:$0xff]  }
  0x5e   :  { %1899 = vmatpush2.bf16.msra.mxu1 %v3261_v60  ;;  %1857 = vmatprep.subr.bf16.mxu0 %v3262_v5  ;;  %v3325_v60 = vld [vmem:[#allocation6 + $0x640] ss:$16 sps:$4 sm:$0xff]   ;;  %v3339_v2 = vld [vmem:[#allocation6 + $0x604] ss:$16 sps:$4 sm:$0xff]  }
  0x5f   :  { %1900 = vmatprep.subr.bf16.mxu1 %v3264_v9  ;;  %v3342_v5 = vld [vmem:[#allocation6 + $0x5e4] ss:$16 sps:$4 sm:$0xff]   ;;  %v3340_v9 = vld [vmem:[#allocation6 + $0x5e0] ss:$16 sps:$4 sm:$0xff]  }
  0x60   :  { %v3345_v6 = vld [vmem:[#allocation6 + $0x7e4] ss:$16 sps:$4 sm:$0xff]   ;;  %v3343_v10 = vld [vmem:[#allocation6 + $0x7e0] ss:$16 sps:$4 sm:$0xff]  }
  0x61   :  { %1858 = vmatpush2.bf16.msra.mxu0 %v3266_v15  ;;  %v3914_v15 = vrot.slane %v3390_v8, %v3888_v56  ;;  %v3348_v20 = vld [vmem:[#allocation6 + $0x5c4] ss:$16 sps:$4 sm:$0xff]   ;;  %v3346_v31 = vld [vmem:[#allocation6 + $0x5c0] ss:$16 sps:$4 sm:$0xff]   ;;  %v3400_v8 = vld [vmem:[#allocation6 + $0xe8] ss:$16 sps:$4 sm:$0xff]  }
  0x62   :  { %1901 = vmatpush2.bf16.msra.mxu1 %v3267_v16  ;;  %1859 = vmatprep.subr.bf16.mxu0 %v3268_v18  ;;  %v3397_v16 = vld [vmem:[#allocation3 + $0x2c] ss:$16 sps:$4 sm:$0xff]   ;;  %v3349_v32 = vld [vmem:[#allocation6 + $0x7c0] ss:$16 sps:$4 sm:$0xff]  }
  0x63   :  { %1902 = vmatprep.subr.bf16.mxu1 %v3270_v21  ;;  %v3399_v18 = vld [vmem:[#allocation3 + $0x6c] ss:$16 sps:$4 sm:$0xff]   ;;  %v3917_v21 = vrot.slane %v3392_v11, %v3888_v56 }
  0x64   :  { %v3936_v30 = vrot.slane %v3399_v18, %v3888_v56  ;;  %v3411_v11 = vld [vmem:[#allocation6 + $0x2cc] ss:$16 sps:$4 sm:$0xff]  }
  0x65   :  { %1860 = vmatpush2.bf16.msra.mxu0 %v3272_v23  ;;  %v3920_v23 = vrot.slane %v3394_v12, %v3888_v56  ;;  %v3406_v12 = vld [vmem:[#allocation6 + $0xc8] ss:$16 sps:$4 sm:$0xff]   ;;  %v3420_v18 = vld [vmem:[#allocation6 + $0x8c] ss:$16 sps:$4 sm:$0xff]  }
  0x66   :  { %1903 = vmatpush2.bf16.msra.mxu1 %v3273_v24  ;;  %1861 = vmatprep.subr.bf16.mxu0 %v3274_v25  ;;  %v3923_v24 = vrot.slane %v3396_v13, %v3888_v56  ;;  %v3351_v25 = vld [vmem:[#allocation6 + $0x7c4] ss:$16 sps:$4 sm:$0xff]   ;;  %v3409_v13 = vld [vmem:[#allocation6 + $0x2c8] ss:$16 sps:$4 sm:$0xff]  }
  0x67   :  { %1904 = vmatprep.subr.bf16.mxu1 %v3276_v26  ;;  %v175_v26 = vcombine.high %v3911_v14, %v3914_v15  ;;  %v247_v29 = vcombine.high %v3917_v21, %v3920_v23 }
  0x69   :  { %1862 = vmatpush2.bf16.msra.mxu0 %v3278_v27  ;;  %v3928_v27 = vrot.slane %v3397_v16, %v3888_v56  ;;  %v3412_v16 = vld [vmem:[#allocation6 + $0xa8] ss:$16 sps:$4 sm:$0xff]  }
  0x6a   :  { %1905 = vmatpush2.bf16.msra.mxu1 %v3279_v28  ;;  %1917 = vmatprep.subr.bf16.mxu0 %v3294_v33  ;;  %v3931_v28 = vrot.slane %v3398_v17, %v3888_v56  ;;  %v3415_v17 = vld [vmem:[#allocation6 + $0x2a8] ss:$16 sps:$4 sm:$0xff]  }
  0x6b   :  { %1960 = vmatprep.subr.bf16.mxu1 %v3297_v34  ;;  %v177_v33 = vcombine.high %v3923_v24, %v3928_v27  ;;  %v3354_v34 = vld [vmem:[#allocation6 + $0x5a4] ss:$16 sps:$4 sm:$0xff]  }
  0x6c   :  { %1864 = vmatmul.mubr.bf16.vlgmr.msra.gmra.mxu0 %v3904_v35 }
  0x6d   :  { %1907 = vmatmul.mubr.bf16.vlgmr.msra.gmra.mxu1 %v3906_v36  ;;  %1918 = vmatpush1.bf16.msra.mxu0 %v3292_v37  ;;  %v3940_v37 = vpack.c.bf16 %v247_v29, %v175_v26  ;;  %v3424_v26 = vld [vmem:[#allocation6 + $0x68] ss:$16 sps:$4 sm:$0xff]  }
  0x6e   :  { %1961 = vmatpush1.bf16.msra.mxu1 %v3295_v38  ;;  %1919 = vmatprep.subr.bf16.mxu0 %v3300_v39  ;;  %v249_v38 = vcombine.high %v3931_v28, %v3936_v30  ;;  %v3357_v39 = vld [vmem:[#allocation6 + $0x7a4] ss:$16 sps:$4 sm:$0xff]   ;;  %v3433_v29 = vld [vmem:[#allocation6 + $0x248] ss:$16 sps:$4 sm:$0xff]  }
  0x6f   :  { %1962 = vmatprep.subr.bf16.mxu1 %v3303_v40  ;;  %1949 = vmatprep.mubr.bf16.mxu0 %v3940_v37  ;;  %v3352_v40 = vld [vmem:[#allocation6 + $0x5a0] ss:$16 sps:$4 sm:$0xff]  }
  0x70   :  { %v3945_v56 = vpack.c.bf16 %v249_v38, %v177_v33  ;;  %v3439_v33 = vld [vmem:[#allocation6 + $0x228] ss:$16 sps:$4 sm:$0xff]   ;;  %v3447_v38 = vld [vmem:[#allocation6 + $0x20c] ss:$16 sps:$4 sm:$0xff]  }
  0x71   :  { %1920 = vmatpush1.bf16.msra.mxu0 %v3298_v41  ;;  %v3355_v41 = vld [vmem:[#allocation6 + $0x7a0] ss:$16 sps:$4 sm:$0xff]  }
  0x72   :  { %1963 = vmatpush1.bf16.msra.mxu1 %v3301_v42  ;;  %1921 = vmatprep.subr.bf16.mxu0 %v3306_v43  ;;  %v3360_v42 = vld [vmem:[#allocation6 + $0x584] ss:$16 sps:$4 sm:$0xff]  }
  0x73   :  { %1964 = vmatprep.subr.bf16.mxu1 %v3309_v44  ;;  %v3363_v43 = vld [vmem:[#allocation6 + $0x784] ss:$16 sps:$4 sm:$0xff]   ;;  %1992 = vmatprep.mubr.bf16.mxu1 %v3945_v56  ;;  %v3358_v44 = vld [vmem:[#allocation6 + $0x580] ss:$16 sps:$4 sm:$0xff]  }
  0x75   :  { %1922 = vmatpush1.bf16.msra.mxu0 %v3304_v45  ;;  %v3361_v45 = vld [vmem:[#allocation6 + $0x780] ss:$16 sps:$4 sm:$0xff]  }
  0x76   :  { %1965 = vmatpush1.bf16.msra.mxu1 %v3307_v46  ;;  %1923 = vmatprep.subr.bf16.mxu0 %v3312_v47  ;;  %v3366_v46 = vld [vmem:[#allocation6 + $0x564] ss:$16 sps:$4 sm:$0xff]  }
  0x77   :  { %1966 = vmatprep.subr.bf16.mxu1 %v3315_v48  ;;  %v3369_v47 = vld [vmem:[#allocation6 + $0x764] ss:$16 sps:$4 sm:$0xff]   ;;  %v3364_v48 = vld [vmem:[#allocation6 + $0x560] ss:$16 sps:$4 sm:$0xff]  }
  0x79   :  { %1924 = vmatpush1.bf16.msra.mxu0 %v3310_v50  ;;  %v3367_v50 = vld [vmem:[#allocation6 + $0x760] ss:$16 sps:$4 sm:$0xff]  }
  0x7a   :  { %1967 = vmatpush1.bf16.msra.mxu1 %v3313_v51  ;;  %1925 = vmatprep.subr.bf16.mxu0 %v3318_v52  ;;  %v3372_v51 = vld [vmem:[#allocation6 + $0x544] ss:$16 sps:$4 sm:$0xff]  }
  0x7b   :  { %1968 = vmatprep.subr.bf16.mxu1 %v3321_v53  ;;  %v3375_v52 = vld [vmem:[#allocation6 + $0x744] ss:$16 sps:$4 sm:$0xff]   ;;  %v3370_v53 = vld [vmem:[#allocation6 + $0x540] ss:$16 sps:$4 sm:$0xff]  }
  0x7d   :  { %1926 = vmatpush1.bf16.msra.mxu0 %v3316_v54  ;;  %v3373_v54 = vld [vmem:[#allocation6 + $0x740] ss:$16 sps:$4 sm:$0xff]  }
  0x7e   :  { %1969 = vmatpush1.bf16.msra.mxu1 %v3319_v55  ;;  %1927 = vmatprep.subr.bf16.mxu0 %v3324_v57  ;;  %v3378_v55 = vld [vmem:[#allocation6 + $0x524] ss:$16 sps:$4 sm:$0xff]  }
  0x7f   :  { %1970 = vmatprep.subr.bf16.mxu1 %v3327_v58  ;;  %v3381_v57 = vld [vmem:[#allocation6 + $0x724] ss:$16 sps:$4 sm:$0xff]   ;;  %v3376_v58 = vld [vmem:[#allocation6 + $0x520] ss:$16 sps:$4 sm:$0xff]  }
  0x81   :  { %1928 = vmatpush1.bf16.msra.mxu0 %v3322_v59  ;;  %v3379_v59 = vld [vmem:[#allocation6 + $0x720] ss:$16 sps:$4 sm:$0xff]  }
  0x82   :  { %1971 = vmatpush1.bf16.msra.mxu1 %v3325_v60  ;;  %1929 = vmatprep.subr.bf16.mxu0 %v3330_v61  ;;  %v3384_v60 = vld [vmem:[#allocation6 + $0x504] ss:$16 sps:$4 sm:$0xff]  }
  0x83   :  { %1972 = vmatprep.subr.bf16.mxu1 %v3333_v62  ;;  %v3387_v61 = vld [vmem:[#allocation6 + $0x704] ss:$16 sps:$4 sm:$0xff]   ;;  %v3382_v62 = vld [vmem:[#allocation6 + $0x500] ss:$16 sps:$4 sm:$0xff]  }
  0x85   :  { %1930 = vmatpush1.bf16.msra.mxu0 %v3328_v63  ;;  %v3385_v63 = vld [vmem:[#allocation6 + $0x700] ss:$16 sps:$4 sm:$0xff]  }
  0x86   :  { %1973 = vmatpush1.bf16.msra.mxu1 %v3331_v0  ;;  %1931 = vmatprep.subr.bf16.mxu0 %v3336_v1  ;;  %v174_v0 = vcombine.low %v3911_v14, %v3914_v15  ;;  %v246_v1 = vcombine.low %v3917_v21, %v3920_v23  ;;  %v3414_v14 = vld [vmem:[#allocation6 + $0xac] ss:$16 sps:$4 sm:$0xff]   ;;  %v3418_v21 = vld [vmem:[#allocation6 + $0x88] ss:$16 sps:$4 sm:$0xff]  }
  0x87   :  { %1974 = vmatprep.subr.bf16.mxu1 %v3339_v2  ;;  %v176_v2 = vcombine.low %v3923_v24, %v3928_v27  ;;  %v3417_v15 = vld [vmem:[#allocation6 + $0x2ac] ss:$16 sps:$4 sm:$0xff]   ;;  %v3421_v23 = vld [vmem:[#allocation6 + $0x288] ss:$16 sps:$4 sm:$0xff]  }
  0x88   :  { %v3426_v24 = vld [vmem:[#allocation6 + $0x6c] ss:$16 sps:$4 sm:$0xff]  }
  0x89   :  { %1932 = vmatpush1.bf16.msra.mxu0 %v3334_v3  ;;  %v248_v3 = vcombine.low %v3931_v28, %v3936_v30  ;;  %v3435_v27 = vld [vmem:[#allocation6 + $0x24c] ss:$16 sps:$4 sm:$0xff]   ;;  %v3430_v28 = vld [vmem:[#allocation6 + $0x48] ss:$16 sps:$4 sm:$0xff]  }
  0x8a   :  { %1975 = vmatpush1.bf16.msra.mxu1 %v3337_v4  ;;  %1933 = vmatprep.subr.bf16.mxu0 %v3342_v5  ;;  %v3402_v4 = vld [vmem:[#allocation6 + $0xec] ss:$16 sps:$4 sm:$0xff]  }
  0x8b   :  { %1976 = vmatprep.subr.bf16.mxu1 %v3345_v6  ;;  %v3405_v5 = vld [vmem:[#allocation6 + $0x2ec] ss:$16 sps:$4 sm:$0xff]   ;;  %v3956_v6 = vpack.c.bf16 %v246_v1, %v174_v0  ;;  %v3958_v7 = vpack.c.bf16 %v248_v3, %v176_v2  ;;  %v3478_v1 = vld [vmem:[#allocation6 + $0x148] ss:$16 sps:$4 sm:$0xff]  }
  0x8c   :  { %v3438_v30 = vld [vmem:[#allocation6 + $0x2c] ss:$16 sps:$4 sm:$0xff]   ;;  %v3481_v2 = vld [vmem:[#allocation6 + $0x348] ss:$16 sps:$4 sm:$0xff]  }
  0x8d   :  { %1934 = vmatpush2.bf16.msra.mxu0 %v3340_v9  ;;  %v3403_v9 = vld [vmem:[#allocation6 + $0x2e8] ss:$16 sps:$4 sm:$0xff]   ;;  %v3483_v0 = vld [vmem:[#allocation6 + $0x34c] ss:$16 sps:$4 sm:$0xff]  }
  0x8e   :  { %1977 = vmatpush2.bf16.msra.mxu1 %v3343_v10  ;;  %1935 = vmatprep.subr.bf16.mxu0 %v3348_v20  ;;  %v3408_v10 = vld [vmem:[#allocation6 + $0xcc] ss:$16 sps:$4 sm:$0xff]  }
  0x8f   :  { %1978 = vmatprep.subr.bf16.mxu1 %v3351_v25  ;;  %v3423_v20 = vld [vmem:[#allocation6 + $0x28c] ss:$16 sps:$4 sm:$0xff]  }
  0x90   :  { %v3429_v25 = vld [vmem:[#allocation6 + $0x26c] ss:$16 sps:$4 sm:$0xff]  }
  0x91   :  { %1936 = vmatpush2.bf16.msra.mxu0 %v3346_v31  ;;  %v3441_v31 = vld [vmem:[#allocation6 + $0x22c] ss:$16 sps:$4 sm:$0xff]  }
  0x92   :  { %1979 = vmatpush2.bf16.msra.mxu1 %v3349_v32  ;;  %1937 = vmatprep.subr.bf16.mxu0 %v3354_v34  ;;  %v3436_v32 = vld [vmem:[#allocation6 + $0x28] ss:$16 sps:$4 sm:$0xff]   ;;  %v3444_v34 = vld [vmem:[#allocation6 + $0xc] ss:$16 sps:$4 sm:$0xff]  }
  0x93   :  { %1980 = vmatprep.subr.bf16.mxu1 %v3357_v39  ;;  %v3442_v39 = vld [vmem:[#allocation6 + $0x8] ss:$16 sps:$4 sm:$0xff]   ;;  %v3486_v3 = vld [vmem:[#allocation6 + $0x12c] ss:$16 sps:$4 sm:$0xff]  }
  0x95   :  { %1938 = vmatpush2.bf16.msra.mxu0 %v3352_v40  ;;  %v3445_v40 = vld [vmem:[#allocation6 + $0x208] ss:$16 sps:$4 sm:$0xff]  }
  0x96   :  { %1981 = vmatpush2.bf16.msra.mxu1 %v3355_v41  ;;  %1939 = vmatprep.subr.bf16.mxu0 %v3360_v42  ;;  %v3450_v41 = vld [vmem:[#allocation6 + $0x1ec] ss:$16 sps:$4 sm:$0xff]  }
  0x97   :  { %1982 = vmatprep.subr.bf16.mxu1 %v3363_v43  ;;  %v3453_v42 = vld [vmem:[#allocation6 + $0x3ec] ss:$16 sps:$4 sm:$0xff]   ;;  %v3448_v43 = vld [vmem:[#allocation6 + $0x1e8] ss:$16 sps:$4 sm:$0xff]  }
  0x99   :  { %1940 = vmatpush2.bf16.msra.mxu0 %v3358_v44  ;;  %v3451_v44 = vld [vmem:[#allocation6 + $0x3e8] ss:$16 sps:$4 sm:$0xff]  }
  0x9a   :  { %1983 = vmatpush2.bf16.msra.mxu1 %v3361_v45  ;;  %1941 = vmatprep.subr.bf16.mxu0 %v3366_v46  ;;  %v3456_v45 = vld [vmem:[#allocation6 + $0x1cc] ss:$16 sps:$4 sm:$0xff]  }
  0x9b   :  { %1984 = vmatprep.subr.bf16.mxu1 %v3369_v47  ;;  %v3459_v46 = vld [vmem:[#allocation6 + $0x3cc] ss:$16 sps:$4 sm:$0xff]   ;;  %v3454_v47 = vld [vmem:[#allocation6 + $0x1c8] ss:$16 sps:$4 sm:$0xff]  }
  0x9d   :  { %1942 = vmatpush2.bf16.msra.mxu0 %v3364_v48  ;;  %v3457_v48 = vld [vmem:[#allocation6 + $0x3c8] ss:$16 sps:$4 sm:$0xff]  }
  0x9e   :  { %1985 = vmatpush2.bf16.msra.mxu1 %v3367_v50  ;;  %1943 = vmatprep.subr.bf16.mxu0 %v3372_v51  ;;  %v3462_v50 = vld [vmem:[#allocation6 + $0x1ac] ss:$16 sps:$4 sm:$0xff]  }
  0x9f   :  { %1986 = vmatprep.subr.bf16.mxu1 %v3375_v52  ;;  %v3465_v51 = vld [vmem:[#allocation6 + $0x3ac] ss:$16 sps:$4 sm:$0xff]   ;;  %v3460_v52 = vld [vmem:[#allocation6 + $0x1a8] ss:$16 sps:$4 sm:$0xff]  }
  0xa1   :  { %1944 = vmatpush2.bf16.msra.mxu0 %v3370_v53  ;;  %v3463_v53 = vld [vmem:[#allocation6 + $0x3a8] ss:$16 sps:$4 sm:$0xff]  }
  0xa2   :  { %1987 = vmatpush2.bf16.msra.mxu1 %v3373_v54  ;;  %1945 = vmatprep.subr.bf16.mxu0 %v3378_v55  ;;  %v3468_v54 = vld [vmem:[#allocation6 + $0x18c] ss:$16 sps:$4 sm:$0xff]  }
  0xa3   :  { %1988 = vmatprep.subr.bf16.mxu1 %v3381_v57  ;;  %v3471_v55 = vld [vmem:[#allocation6 + $0x38c] ss:$16 sps:$4 sm:$0xff]   ;;  %v3466_v57 = vld [vmem:[#allocation6 + $0x188] ss:$16 sps:$4 sm:$0xff]  }
  0xa5   :  { %1946 = vmatpush2.bf16.msra.mxu0 %v3376_v58  ;;  %v3469_v58 = vld [vmem:[#allocation6 + $0x388] ss:$16 sps:$4 sm:$0xff]  }
  0xa6   :  { %1989 = vmatpush2.bf16.msra.mxu1 %v3379_v59  ;;  %1947 = vmatprep.subr.bf16.mxu0 %v3384_v60  ;;  %v3474_v59 = vld [vmem:[#allocation6 + $0x16c] ss:$16 sps:$4 sm:$0xff]  }
  0xa7   :  { %1990 = vmatprep.subr.bf16.mxu1 %v3387_v61  ;;  %v3477_v60 = vld [vmem:[#allocation6 + $0x36c] ss:$16 sps:$4 sm:$0xff]   ;;  %v3472_v61 = vld [vmem:[#allocation6 + $0x168] ss:$16 sps:$4 sm:$0xff]  }
  0xa9   :  { %1948 = vmatpush2.bf16.msra.mxu0 %v3382_v62  ;;  %v3475_v62 = vld [vmem:[#allocation6 + $0x368] ss:$16 sps:$4 sm:$0xff]  }
  0xaa   :  { %1991 = vmatpush2.bf16.msra.mxu1 %v3385_v63  ;;  %2003 = vmatprep.subr.bf16.mxu0 %v3402_v4  ;;  %v3480_v63 = vld [vmem:[#allocation6 + $0x14c] ss:$16 sps:$4 sm:$0xff]  }
  0xab   :  { %2046 = vmatprep.subr.bf16.mxu1 %v3405_v5  ;;  %v3489_v4 = vld [vmem:[#allocation6 + $0x32c] ss:$16 sps:$4 sm:$0xff]   ;;  %v3484_v5 = vld [vmem:[#allocation6 + $0x128] ss:$16 sps:$4 sm:$0xff]  }
  0xac   :  { %1950 = vmatmul.mubr.bf16.vlgmr.msra.gmra.mxu0 %v3956_v6 }
  0xad   :  { %1993 = vmatmul.mubr.bf16.vlgmr.msra.gmra.mxu1 %v3958_v7  ;;  %2004 = vmatpush1.bf16.msra.mxu0 %v3400_v8  ;;  %v3487_v8 = vld [vmem:[#allocation6 + $0x328] ss:$16 sps:$4 sm:$0xff]  }
  0xae   :  { %2047 = vmatpush1.bf16.msra.mxu1 %v3403_v9  ;;  %2005 = vmatprep.subr.bf16.mxu0 %v3408_v10  ;;  %v3492_v9 = vld [vmem:[#allocation6 + $0x10c] ss:$16 sps:$4 sm:$0xff]  }
  0xaf   :  { %2048 = vmatprep.subr.bf16.mxu1 %v3411_v11  ;;  %2035 = vmatprep.mubr.bf16.mxu0 %v3898_v19  ;;  %v3427_v19 = vld [vmem:[#allocation6 + $0x268] ss:$16 sps:$4 sm:$0xff]   ;;  %v3495_v10 = vld [vmem:[#allocation6 + $0x30c] ss:$16 sps:$4 sm:$0xff]  }
  0xb0   :  { %2078 = vmatprep.mubr.bf16.mxu1 %v3901_v22  ;;  %v3432_v22 = vld [vmem:[#allocation6 + $0x4c] ss:$16 sps:$4 sm:$0xff]   ;;  %v3490_v11 = vld [vmem:[#allocation6 + $0x108] ss:$16 sps:$4 sm:$0xff]  }
  0xb1   :  { %2006 = vmatpush1.bf16.msra.mxu0 %v3406_v12  ;;  %v3493_v12 = vld [vmem:[#allocation6 + $0x308] ss:$16 sps:$4 sm:$0xff]  }
  0xb2   :  { %2049 = vmatpush1.bf16.msra.mxu1 %v3409_v13  ;;  %2007 = vmatprep.subr.bf16.mxu0 %v3414_v14  ;;  %v3498_v13 = vld [vmem:[#allocation6 + $0x4ec] ss:$16 sps:$4 sm:$0xff]  }
  0xb3   :  { %2050 = vmatprep.subr.bf16.mxu1 %v3417_v15  ;;  %v3501_v14 = vld [vmem:[#allocation6 + $0x6ec] ss:$16 sps:$4 sm:$0xff]   ;;  %v3496_v15 = vld [vmem:[#allocation6 + $0x4e8] ss:$16 sps:$4 sm:$0xff]  }
  0xb5   :  { %2008 = vmatpush1.bf16.msra.mxu0 %v3412_v16  ;;  %v3499_v16 = vld [vmem:[#allocation6 + $0x6e8] ss:$16 sps:$4 sm:$0xff]  }
  0xb6   :  { %2051 = vmatpush1.bf16.msra.mxu1 %v3415_v17  ;;  %2009 = vmatprep.subr.bf16.mxu0 %v3420_v18  ;;  %v3504_v17 = vld [vmem:[#allocation6 + $0x4cc] ss:$16 sps:$4 sm:$0xff]  }
  0xb7   :  { %2052 = vmatprep.subr.bf16.mxu1 %v3423_v20  ;;  %v3507_v18 = vld [vmem:[#allocation6 + $0x6cc] ss:$16 sps:$4 sm:$0xff]   ;;  %v3502_v20 = vld [vmem:[#allocation6 + $0x4c8] ss:$16 sps:$4 sm:$0xff]  }
  0xb9   :  { %2010 = vmatpush1.bf16.msra.mxu0 %v3418_v21  ;;  %v3505_v21 = vld [vmem:[#allocation6 + $0x6c8] ss:$16 sps:$4 sm:$0xff]  }
  0xba   :  { %2053 = vmatpush1.bf16.msra.mxu1 %v3421_v23  ;;  %2011 = vmatprep.subr.bf16.mxu0 %v3426_v24  ;;  %v3510_v23 = vld [vmem:[#allocation6 + $0x4ac] ss:$16 sps:$4 sm:$0xff]  }
  0xbb   :  { %2054 = vmatprep.subr.bf16.mxu1 %v3429_v25  ;;  %v3513_v24 = vld [vmem:[#allocation6 + $0x6ac] ss:$16 sps:$4 sm:$0xff]   ;;  %v3508_v25 = vld [vmem:[#allocation6 + $0x4a8] ss:$16 sps:$4 sm:$0xff]  }
  0xbd   :  { %2012 = vmatpush1.bf16.msra.mxu0 %v3424_v26  ;;  %v3511_v26 = vld [vmem:[#allocation6 + $0x6a8] ss:$16 sps:$4 sm:$0xff]  }
  0xbe   :  { %2055 = vmatpush1.bf16.msra.mxu1 %v3427_v19  ;;  %2013 = vmatprep.subr.bf16.mxu0 %v3432_v22  ;;  %v3516_v19 = vld [vmem:[#allocation6 + $0x48c] ss:$16 sps:$4 sm:$0xff]   ;;  %v3514_v22 = vld [vmem:[#allocation6 + $0x488] ss:$16 sps:$4 sm:$0xff]  }
  0xbf   :  { %2056 = vmatprep.subr.bf16.mxu1 %v3435_v27  ;;  %v3522_v27 = vld [vmem:[#allocation6 + $0x46c] ss:$16 sps:$4 sm:$0xff]  }
  0xc1   :  { %2014 = vmatpush1.bf16.msra.mxu0 %v3430_v28  ;;  %v3525_v28 = vld [vmem:[#allocation6 + $0x66c] ss:$16 sps:$4 sm:$0xff]  }
  0xc2   :  { %2057 = vmatpush1.bf16.msra.mxu1 %v3433_v29  ;;  %2015 = vmatprep.subr.bf16.mxu0 %v3438_v30  ;;  %v3520_v29 = vld [vmem:[#allocation6 + $0x468] ss:$16 sps:$4 sm:$0xff]   ;;  %v3531_v30 = vld [vmem:[#allocation6 + $0x64c] ss:$16 sps:$4 sm:$0xff]  }
  0xc3   :  { %2058 = vmatprep.subr.bf16.mxu1 %v3441_v31  ;;  %v3526_v31 = vld [vmem:[#allocation6 + $0x448] ss:$16 sps:$4 sm:$0xff]  }
  0xc5   :  { %2016 = vmatpush1.bf16.msra.mxu0 %v3436_v32  ;;  %v3529_v32 = vld [vmem:[#allocation6 + $0x648] ss:$16 sps:$4 sm:$0xff]  }
  0xc6   :  { %2059 = vmatpush1.bf16.msra.mxu1 %v3439_v33  ;;  %2017 = vmatprep.subr.bf16.mxu0 %v3444_v34  ;;  %v3534_v33 = vld [vmem:[#allocation6 + $0x42c] ss:$16 sps:$4 sm:$0xff]  }
  0xc7   :  { %2060 = vmatprep.subr.bf16.mxu1 %v3447_v38  ;;  %v3537_v34 = vld [vmem:[#allocation6 + $0x62c] ss:$16 sps:$4 sm:$0xff]   ;;  %v3532_v38 = vld [vmem:[#allocation6 + $0x428] ss:$16 sps:$4 sm:$0xff]  }
  0xc9   :  { %2018 = vmatpush1.bf16.msra.mxu0 %v3442_v39  ;;  %v3535_v39 = vld [vmem:[#allocation6 + $0x628] ss:$16 sps:$4 sm:$0xff]  }
  0xca   :  { %2061 = vmatpush1.bf16.msra.mxu1 %v3445_v40  ;;  %2019 = vmatprep.subr.bf16.mxu0 %v3450_v41  ;;  %v3540_v40 = vld [vmem:[#allocation6 + $0x40c] ss:$16 sps:$4 sm:$0xff]  }
  0xcb   :  { %2062 = vmatprep.subr.bf16.mxu1 %v3453_v42  ;;  %v3543_v41 = vld [vmem:[#allocation6 + $0x60c] ss:$16 sps:$4 sm:$0xff]   ;;  %v3538_v42 = vld [vmem:[#allocation6 + $0x408] ss:$16 sps:$4 sm:$0xff]  }
  0xcd   :  { %2020 = vmatpush2.bf16.msra.mxu0 %v3448_v43  ;;  %v3541_v43 = vld [vmem:[#allocation6 + $0x608] ss:$16 sps:$4 sm:$0xff]  }
  0xce   :  { %2063 = vmatpush2.bf16.msra.mxu1 %v3451_v44  ;;  %2021 = vmatprep.subr.bf16.mxu0 %v3456_v45  ;;  %v3546_v44 = vld [vmem:[#allocation6 + $0x5ec] ss:$16 sps:$4 sm:$0xff]  }
  0xcf   :  { %2064 = vmatprep.subr.bf16.mxu1 %v3459_v46  ;;  %v3549_v45 = vld [vmem:[#allocation6 + $0x7ec] ss:$16 sps:$4 sm:$0xff]   ;;  %v3544_v46 = vld [vmem:[#allocation6 + $0x5e8] ss:$16 sps:$4 sm:$0xff]  }
  0xd1   :  { %2022 = vmatpush2.bf16.msra.mxu0 %v3454_v47  ;;  %v3547_v47 = vld [vmem:[#allocation6 + $0x7e8] ss:$16 sps:$4 sm:$0xff]  }
  0xd2   :  { %2065 = vmatpush2.bf16.msra.mxu1 %v3457_v48  ;;  %2023 = vmatprep.subr.bf16.mxu0 %v3462_v50  ;;  %v3552_v48 = vld [vmem:[#allocation6 + $0x5cc] ss:$16 sps:$4 sm:$0xff]  }
  0xd3   :  { %2066 = vmatprep.subr.bf16.mxu1 %v3465_v51  ;;  %v3555_v50 = vld [vmem:[#allocation6 + $0x7cc] ss:$16 sps:$4 sm:$0xff]   ;;  %v3550_v51 = vld [vmem:[#allocation6 + $0x5c8] ss:$16 sps:$4 sm:$0xff]  }
  0xd5   :  { %2024 = vmatpush2.bf16.msra.mxu0 %v3460_v52  ;;  %v3553_v52 = vld [vmem:[#allocation6 + $0x7c8] ss:$16 sps:$4 sm:$0xff]  }
  0xd6   :  { %2067 = vmatpush2.bf16.msra.mxu1 %v3463_v53  ;;  %2025 = vmatprep.subr.bf16.mxu0 %v3468_v54  ;;  %v3558_v53 = vld [vmem:[#allocation6 + $0x5ac] ss:$16 sps:$4 sm:$0xff]  }
  0xd7   :  { %2068 = vmatprep.subr.bf16.mxu1 %v3471_v55  ;;  %v3561_v54 = vld [vmem:[#allocation6 + $0x7ac] ss:$16 sps:$4 sm:$0xff]   ;;  %v3556_v55 = vld [vmem:[#allocation6 + $0x5a8] ss:$16 sps:$4 sm:$0xff]  }
  0xd9   :  { %2026 = vmatpush2.bf16.msra.mxu0 %v3466_v57  ;;  %v3559_v57 = vld [vmem:[#allocation6 + $0x7a8] ss:$16 sps:$4 sm:$0xff]  }
  0xda   :  { %2069 = vmatpush2.bf16.msra.mxu1 %v3469_v58  ;;  %2027 = vmatprep.subr.bf16.mxu0 %v3474_v59  ;;  %v3564_v58 = vld [vmem:[#allocation6 + $0x58c] ss:$16 sps:$4 sm:$0xff]  }
  0xdb   :  { %2070 = vmatprep.subr.bf16.mxu1 %v3477_v60  ;;  %v3567_v59 = vld [vmem:[#allocation6 + $0x78c] ss:$16 sps:$4 sm:$0xff]   ;;  %v3562_v60 = vld [vmem:[#allocation6 + $0x588] ss:$16 sps:$4 sm:$0xff]  }
  0xdd   :  { %2028 = vmatpush2.bf16.msra.mxu0 %v3472_v61  ;;  %v3565_v61 = vld [vmem:[#allocation6 + $0x788] ss:$16 sps:$4 sm:$0xff]  }
  0xde   :  { %2071 = vmatpush2.bf16.msra.mxu1 %v3475_v62  ;;  %2029 = vmatprep.subr.bf16.mxu0 %v3480_v63  ;;  %v3570_v62 = vld [vmem:[#allocation6 + $0x56c] ss:$16 sps:$4 sm:$0xff]  }
  0xdf   :  { %2072 = vmatprep.subr.bf16.mxu1 %v3483_v0  ;;  %v3573_v63 = vld [vmem:[#allocation6 + $0x76c] ss:$16 sps:$4 sm:$0xff]   ;;  %v3568_v0 = vld [vmem:[#allocation6 + $0x568] ss:$16 sps:$4 sm:$0xff]  }
  0xe1   :  { %2030 = vmatpush2.bf16.msra.mxu0 %v3478_v1  ;;  %v3571_v1 = vld [vmem:[#allocation6 + $0x768] ss:$16 sps:$4 sm:$0xff]  }
  0xe2   :  { %2073 = vmatpush2.bf16.msra.mxu1 %v3481_v2  ;;  %2031 = vmatprep.subr.bf16.mxu0 %v3486_v3  ;;  %v3576_v2 = vld [vmem:[#allocation6 + $0x54c] ss:$16 sps:$4 sm:$0xff]  }
  0xe3   :  { %2074 = vmatprep.subr.bf16.mxu1 %v3489_v4  ;;  %v3579_v3 = vld [vmem:[#allocation6 + $0x74c] ss:$16 sps:$4 sm:$0xff]   ;;  %v3574_v4 = vld [vmem:[#allocation6 + $0x548] ss:$16 sps:$4 sm:$0xff]  }
  0xe5   :  { %2032 = vmatpush2.bf16.msra.mxu0 %v3484_v5  ;;  %v3577_v5 = vld [vmem:[#allocation6 + $0x748] ss:$16 sps:$4 sm:$0xff]  }
  0xe6   :  { %2075 = vmatpush2.bf16.msra.mxu1 %v3487_v8  ;;  %2033 = vmatprep.subr.bf16.mxu0 %v3492_v9  ;;  %v3582_v8 = vld [vmem:[#allocation6 + $0x52c] ss:$16 sps:$4 sm:$0xff]  }
  0xe7   :  { %2076 = vmatprep.subr.bf16.mxu1 %v3495_v10  ;;  %v3585_v9 = vld [vmem:[#allocation6 + $0x72c] ss:$16 sps:$4 sm:$0xff]   ;;  %v3580_v10 = vld [vmem:[#allocation6 + $0x528] ss:$16 sps:$4 sm:$0xff]  }
  0xe9   :  { %2034 = vmatpush2.bf16.msra.mxu0 %v3490_v11  ;;  %v3583_v11 = vld [vmem:[#allocation6 + $0x728] ss:$16 sps:$4 sm:$0xff]  }
  0xea   :  { %2077 = vmatpush2.bf16.msra.mxu1 %v3493_v12  ;;  %2089 = vmatprep.subr.bf16.mxu0 %v3498_v13  ;;  %v3588_v12 = vld [vmem:[#allocation6 + $0x50c] ss:$16 sps:$4 sm:$0xff]  }
  0xeb   :  { %2132 = vmatprep.subr.bf16.mxu1 %v3501_v14  ;;  %v3591_v13 = vld [vmem:[#allocation6 + $0x70c] ss:$16 sps:$4 sm:$0xff]   ;;  %v3586_v14 = vld [vmem:[#allocation6 + $0x508] ss:$16 sps:$4 sm:$0xff]  }
  0xec   :  { %2036 = vmatmul.mubr.bf16.vlgmr.msra.gmra.mxu0 %v3904_v35  ;;  %v3519_v35 = vld [vmem:[#allocation6 + $0x68c] ss:$16 sps:$4 sm:$0xff]  }
  0xed   :  { %2079 = vmatmul.mubr.bf16.vlgmr.msra.gmra.mxu1 %v3906_v36  ;;  %2090 = vmatpush1.bf16.msra.mxu0 %v3496_v15  ;;  %v3517_v36 = vld [vmem:[#allocation6 + $0x688] ss:$16 sps:$4 sm:$0xff]  }
  0xee   :  { %2133 = vmatpush1.bf16.msra.mxu1 %v3499_v16  ;;  %2091 = vmatprep.subr.bf16.mxu0 %v3504_v17  ;;  %v3589_v15 = vld [vmem:[#allocation6 + $0x708] ss:$16 sps:$4 sm:$0xff]   ;;  %v3594_v16 = vld [vmem:[#allocation8 + $0x74] ss:$8 sps:$4 sm:$0xff]  }
  0xef   :  { %2134 = vmatprep.subr.bf16.mxu1 %v3507_v18  ;;  %2121 = vmatprep.mubr.bf16.mxu0 %v3940_v37  ;;  %v3523_v37 = vld [vmem:[#allocation6 + $0x668] ss:$16 sps:$4 sm:$0xff]   ;;  %v3597_v18 = vld [vmem:[#allocation8 + $0x64] ss:$8 sps:$4 sm:$0xff]  }
  0xf0   :  { %2164 = vmatprep.mubr.bf16.mxu1 %v3945_v56  ;;  %v3528_v56 = vld [vmem:[#allocation6 + $0x44c] ss:$16 sps:$4 sm:$0xff]   ;;  %v3592_v17 = vld [vmem:[#allocation8 + $0x70] ss:$8 sps:$4 sm:$0xff]  }
  0xf1   :  { %2092 = vmatpush1.bf16.msra.mxu0 %v3502_v20  ;;  %v3595_v20 = vld [vmem:[#allocation8 + $0x60] ss:$8 sps:$4 sm:$0xff]  }
  0xf2   :  { %2135 = vmatpush1.bf16.msra.mxu1 %v3505_v21  ;;  %2093 = vmatprep.subr.bf16.mxu0 %v3510_v23  ;;  %v3600_v21 = vld [vmem:[#allocation8 + $0x54] ss:$8 sps:$4 sm:$0xff]   ;;  %v3598_v23 = vld [vmem:[#allocation8 + $0x50] ss:$8 sps:$4 sm:$0xff]  }
  0xf3   :  { %2136 = vmatprep.subr.bf16.mxu1 %v3513_v24  ;;  %v3603_v24 = vld [vmem:[#allocation8 + $0x44] ss:$8 sps:$4 sm:$0xff]  }
  0xf5   :  { %2094 = vmatpush1.bf16.msra.mxu0 %v3508_v25  ;;  %v3601_v25 = vld [vmem:[#allocation8 + $0x40] ss:$8 sps:$4 sm:$0xff]  }
  0xf6   :  { %2137 = vmatpush1.bf16.msra.mxu1 %v3511_v26  ;;  %2095 = vmatprep.subr.bf16.mxu0 %v3516_v19  ;;  %v3640_v26 = vld [vmem:[#allocation8 + $0x170] ss:$8 sps:$4 sm:$0xff]   ;;  %v3642_v19 = vld [vmem:[#allocation8 + $0x174] ss:$8 sps:$4 sm:$0xff]  }
  0xf7   :  { %2138 = vmatprep.subr.bf16.mxu1 %v3519_v35  ;;  %v3606_v35 = vld [vmem:[#allocation8 + $0x34] ss:$8 sps:$4 sm:$0xff]  }
  0xf9   :  { %2096 = vmatpush1.bf16.msra.mxu0 %v3514_v22  ;;  %v3645_v22 = vld [vmem:[#allocation8 + $0x164] ss:$8 sps:$4 sm:$0xff]  }
  0xfa   :  { %2139 = vmatpush1.bf16.msra.mxu1 %v3517_v36  ;;  %2097 = vmatprep.subr.bf16.mxu0 %v3522_v27  ;;  %v3648_v36 = vld [vmem:[#allocation8 + $0x154] ss:$8 sps:$4 sm:$0xff]   ;;  %v3609_v27 = vld [vmem:[#allocation8 + $0x24] ss:$8 sps:$4 sm:$0xff]  }
  0xfb   :  { %2140 = vmatprep.subr.bf16.mxu1 %v3525_v28  ;;  %v3646_v28 = vld [vmem:[#allocation8 + $0x150] ss:$8 sps:$4 sm:$0xff]  }
  0xfd   :  { %2098 = vmatpush1.bf16.msra.mxu0 %v3520_v29  ;;  %v3607_v29 = vld [vmem:[#allocation8 + $0x20] ss:$8 sps:$4 sm:$0xff]  }
  0xfe   :  { %2141 = vmatpush1.bf16.msra.mxu1 %v3523_v37  ;;  %2099 = vmatprep.subr.bf16.mxu0 %v3528_v56  ;;  %v3651_v37 = vld [vmem:[#allocation8 + $0x144] ss:$8 sps:$4 sm:$0xff]   ;;  %v3612_v56 = vld [vmem:[#allocation8 + $0x14] ss:$8 sps:$4 sm:$0xff]  }
  0xff   :  { %2142 = vmatprep.subr.bf16.mxu1 %v3531_v30  ;;  %v3649_v30 = vld [vmem:[#allocation8 + $0x140] ss:$8 sps:$4 sm:$0xff]  }
 0x101   :  { %2100 = vmatpush1.bf16.msra.mxu0 %v3526_v31  ;;  %v3610_v31 = vld [vmem:[#allocation8 + $0x10] ss:$8 sps:$4 sm:$0xff]  }
 0x102   :  { %2143 = vmatpush1.bf16.msra.mxu1 %v3529_v32  ;;  %2101 = vmatprep.subr.bf16.mxu0 %v3534_v33  ;;  %v3615_v32 = vld [vmem:[#allocation8 + $0x4] ss:$8 sps:$4 sm:$0xff]   ;;  %v3613_v33 = vld [vmem:[#allocation8] ss:$8 sps:$4 sm:$0xff]  }
 0x103   :  { %2144 = vmatprep.subr.bf16.mxu1 %v3537_v34  ;;  %v3618_v34 = vld [vmem:[#allocation8 + $0xf4] ss:$8 sps:$4 sm:$0xff]  }
 0x105   :  { %2102 = vmatpush1.bf16.msra.mxu0 %v3532_v38  ;;  %v3616_v38 = vld [vmem:[#allocation8 + $0xf0] ss:$8 sps:$4 sm:$0xff]  }
 0x106   :  { %2145 = vmatpush1.bf16.msra.mxu1 %v3535_v39  ;;  %2103 = vmatprep.subr.bf16.mxu0 %v3540_v40  ;;  %v3621_v39 = vld [vmem:[#allocation8 + $0xe4] ss:$8 sps:$4 sm:$0xff]   ;;  %v3619_v40 = vld [vmem:[#allocation8 + $0xe0] ss:$8 sps:$4 sm:$0xff]  }
 0x107   :  { %2146 = vmatprep.subr.bf16.mxu1 %v3543_v41  ;;  %v3624_v41 = vld [vmem:[#allocation8 + $0xd4] ss:$8 sps:$4 sm:$0xff]  }
 0x109   :  { %2104 = vmatpush1.bf16.msra.mxu0 %v3538_v42  ;;  %v3622_v42 = vld [vmem:[#allocation8 + $0xd0] ss:$8 sps:$4 sm:$0xff]  }
 0x10a   :  { %2147 = vmatpush1.bf16.msra.mxu1 %v3541_v43  ;;  %2105 = vmatprep.subr.bf16.mxu0 %v3546_v44  ;;  %v3627_v43 = vld [vmem:[#allocation8 + $0xc4] ss:$8 sps:$4 sm:$0xff]   ;;  %v3625_v44 = vld [vmem:[#allocation8 + $0xc0] ss:$8 sps:$4 sm:$0xff]  }
 0x10b   :  { %2148 = vmatprep.subr.bf16.mxu1 %v3549_v45  ;;  %v3630_v45 = vld [vmem:[#allocation8 + $0xb4] ss:$8 sps:$4 sm:$0xff]  }
 0x10d   :  { %2106 = vmatpush2.bf16.msra.mxu0 %v3544_v46  ;;  %v3628_v46 = vld [vmem:[#allocation8 + $0xb0] ss:$8 sps:$4 sm:$0xff]  }
 0x10e   :  { %2149 = vmatpush2.bf16.msra.mxu1 %v3547_v47  ;;  %2107 = vmatprep.subr.bf16.mxu0 %v3552_v48  ;;  %v3633_v47 = vld [vmem:[#allocation8 + $0xa4] ss:$8 sps:$4 sm:$0xff]   ;;  %v3631_v48 = vld [vmem:[#allocation8 + $0xa0] ss:$8 sps:$4 sm:$0xff]  }
 0x10f   :  { %2150 = vmatprep.subr.bf16.mxu1 %v3555_v50 }
 0x111   :  { %2108 = vmatpush2.bf16.msra.mxu0 %v3550_v51 }
 0x112   :  { %2151 = vmatpush2.bf16.msra.mxu1 %v3553_v52  ;;  %2109 = vmatprep.subr.bf16.mxu0 %v3558_v53  ;;  %v3636_v52 = vld [vmem:[#allocation8 + $0x94] ss:$8 sps:$4 sm:$0xff]   ;;  %v3971_v53 = vsub.s32 0, %v3885_v49 }
 0x113   :  { %2152 = vmatprep.subr.bf16.mxu1 %v3561_v54  ;;  %v3976_v54 = vld [vmem:[%s4012_s2] sm:$0xf] }
 0x115   :  { %2110 = vmatpush2.bf16.msra.mxu0 %v3556_v55  ;;  %v537_v55 = vsub.s32 1, %v3885_v49 }
 0x116   :  { %2153 = vmatpush2.bf16.msra.mxu1 %v3559_v57  ;;  %2111 = vmatprep.subr.bf16.mxu0 %v3564_v58  ;;  %v3634_v57 = vld [vmem:[#allocation8 + $0x90] ss:$8 sps:$4 sm:$0xff]  }
 0x117   :  { %2154 = vmatprep.subr.bf16.mxu1 %v3567_v59 }
 0x119   :  { %2112 = vmatpush2.bf16.msra.mxu0 %v3562_v60  ;;  %v3639_v60 = vld [vmem:[#allocation8 + $0x84] ss:$8 sps:$4 sm:$0xff]  }
 0x11a   :  { %2155 = vmatpush2.bf16.msra.mxu1 %v3565_v61  ;;  %2113 = vmatprep.subr.bf16.mxu0 %v3570_v62  ;;  %v534_v61 = vrot.slane %v3976_v54, %v3971_v53  ;;  %v538_v62 = vrot.slane %v3976_v54, %v537_v55 }
 0x11b   :  { %2156 = vmatprep.subr.bf16.mxu1 %v3573_v63  ;;  %v3637_v63 = vld [vmem:[#allocation8 + $0x80] ss:$8 sps:$4 sm:$0xff]  }
 0x11d   :  { %2114 = vmatpush2.bf16.msra.mxu0 %v3568_v0 }
 0x11e   :  { %2157 = vmatpush2.bf16.msra.mxu1 %v3571_v1  ;;  %2115 = vmatprep.subr.bf16.mxu0 %v3576_v2 }
 0x11f   :  { %2158 = vmatprep.subr.bf16.mxu1 %v3579_v3 }
 0x121   :  { %2116 = vmatpush2.bf16.msra.mxu0 %v3574_v4 }
 0x122   :  { %2159 = vmatpush2.bf16.msra.mxu1 %v3577_v5  ;;  %2117 = vmatprep.subr.bf16.mxu0 %v3582_v8  ;;  %v3654_v8 = vld [vmem:[#allocation8 + $0x134] ss:$8 sps:$4 sm:$0xff]  }
 0x123   :  { %2160 = vmatprep.subr.bf16.mxu1 %v3585_v9 }
 0x125   :  { %2118 = vmatpush2.bf16.msra.mxu0 %v3580_v10 }
 0x126   :  { %2161 = vmatpush2.bf16.msra.mxu1 %v3583_v11  ;;  %2119 = vmatprep.subr.bf16.mxu0 %v3588_v12  ;;  %v3652_v11 = vld [vmem:[#allocation8 + $0x130] ss:$8 sps:$4 sm:$0xff]  }
 0x127   :  { %2162 = vmatprep.subr.bf16.mxu1 %v3591_v13 }
 0x129   :  { %2120 = vmatpush2.bf16.msra.mxu0 %v3586_v14 }
 0x12a   :  { %2163 = vmatpush2.bf16.msra.mxu1 %v3589_v15  ;;  %2630 = vmatprep.subr.bf16.mxu0 %v3594_v16 }
 0x12b   :  { %2673 = vmatprep.subr.bf16.mxu1 %v3642_v19 }
 0x12c   :  { %2122 = vmatmul.mubr.bf16.vlgmr.msra.gmra.mxu0 %v3956_v6  ;;  %v3643_v6 = vld [vmem:[#allocation8 + $0x160] ss:$8 sps:$4 sm:$0xff]   ;;  %v1865_v50 = vpop.f32.mrf.mxu0 }
 0x12d   :  { %2165 = vmatmul.mubr.bf16.vlgmr.msra.gmra.mxu1 %v3958_v7  ;;  %2631 = vmatpush1.bf16.msra.mxu0 %v3592_v17  ;;  %v3604_v7 = vld [vmem:[#allocation8 + $0x30] ss:$8 sps:$4 sm:$0xff]   ;;  %v1908_v51 = vpop.f32.mrf.mxu1  ;;  %v1866_v2 = vadd.f32 %v1865_v50, %v534_v61 }
 0x12e   :  { %2632 = vmatprep.subr.bf16.mxu0 %v3597_v18  ;;  %2674 = vmatpush1.bf16.msra.mxu1 %v3640_v26  ;;  %v1867_v58 = vpop.f32.mrf.mxu0 }
 0x12f   :  { %2675 = vmatprep.subr.bf16.mxu1 %v3645_v22  ;;  %v1910_v59 = vpop.f32.mrf.mxu1  ;;  %v1868_v3 = vadd.f32 %v1867_v58, %v538_v62  ;;  %v1909_v9 = vadd.f32 %v1908_v51, %v1866_v2  ;;  %v3682_v2 = vld [vmem:[#allocation8 + $0x190] ss:$8 sps:$4 sm:$0xff]  }
 0x130   :  { %v1869_v0 = vpop.f32.mrf.mxu0 }
 0x131   :  { %2633 = vmatpush1.bf16.msra.mxu0 %v3595_v20  ;;  %v1912_v1 = vpop.f32.mrf.mxu1  ;;  %v1870_v10 = vadd.f32 %v1869_v0, %v534_v61  ;;  %v1911_v14 = vadd.f32 %v1910_v59, %v1868_v3  ;;  %v3657_v20 = vld [vmem:[#allocation8 + $0x124] ss:$8 sps:$4 sm:$0xff]   ;;  %v3673_v59 = vld [vmem:[#allocation8 + $0x1c0] ss:$8 sps:$4 sm:$0xff]   ;;  %v3676_v61 = vld [vmem:[#allocation8 + $0x1b0] ss:$8 sps:$4 sm:$0xff]  }
 0x132   :  { %2634 = vmatprep.subr.bf16.mxu0 %v3600_v21  ;;  %2676 = vmatpush1.bf16.msra.mxu1 %v3643_v6  ;;  %v1871_v4 = vpop.f32.mrf.mxu0  ;;  %v3684_v0 = vld [vmem:[#allocation8 + $0x194] ss:$8 sps:$4 sm:$0xff]  }
 0x133   :  { %2677 = vmatprep.subr.bf16.mxu1 %v3648_v36  ;;  %v1914_v5 = vpop.f32.mrf.mxu1  ;;  %v1872_v15 = vadd.f32 %v1871_v4, %v538_v62  ;;  %v1913_v21 = vadd.f32 %v1912_v1, %v1870_v10  ;;  %v3681_v62 = vld [vmem:[#allocation8 + $0x1a4] ss:$8 sps:$4 sm:$0xff]  }
 0x135   :  { %2635 = vmatpush1.bf16.msra.mxu0 %v3598_v23 }
 0x136   :  { %2636 = vmatprep.subr.bf16.mxu0 %v3603_v24  ;;  %2678 = vmatpush1.bf16.msra.mxu1 %v3646_v28 }
 0x137   :  { %2679 = vmatprep.subr.bf16.mxu1 %v3651_v37 }
 0x139   :  { %2637 = vmatpush1.bf16.msra.mxu0 %v3601_v25  ;;  %v3655_v25 = vld [vmem:[#allocation8 + $0x120] ss:$8 sps:$4 sm:$0xff]  }
 0x13a   :  { %2638 = vmatprep.subr.bf16.mxu0 %v3606_v35  ;;  %2680 = vmatpush1.bf16.msra.mxu1 %v3649_v30  ;;  %v1915_v35 = vadd.f32 %v1914_v5, %v1872_v15 }
 0x13b   :  { %2681 = vmatprep.subr.bf16.mxu1 %v3654_v8 }
 0x13d   :  { %2639 = vmatpush1.bf16.msra.mxu0 %v3604_v7 }
 0x13e   :  { %2640 = vmatprep.subr.bf16.mxu0 %v3609_v27  ;;  %2682 = vmatpush1.bf16.msra.mxu1 %v3652_v11  ;;  %v3660_v27 = vld [vmem:[#allocation8 + $0x114] ss:$8 sps:$4 sm:$0xff]  }
 0x13f   :  { %2683 = vmatprep.subr.bf16.mxu1 %v3657_v20  ;;  %v545_v20 = vsub.s32 3, %v3885_v49 }
 0x141   :  { %2641 = vmatpush1.bf16.msra.mxu0 %v3607_v29 }
 0x142   :  { %2642 = vmatprep.subr.bf16.mxu0 %v3612_v56  ;;  %2684 = vmatpush1.bf16.msra.mxu1 %v3655_v25  ;;  %v3658_v56 = vld [vmem:[#allocation8 + $0x110] ss:$8 sps:$4 sm:$0xff]  }
 0x143   :  { %2685 = vmatprep.subr.bf16.mxu1 %v3660_v27 }
 0x145   :  { %2643 = vmatpush1.bf16.msra.mxu0 %v3610_v31 }
 0x146   :  { %2644 = vmatprep.subr.bf16.mxu0 %v3615_v32  ;;  %2686 = vmatpush1.bf16.msra.mxu1 %v3658_v56 }
 0x149   :  { %2645 = vmatpush1.bf16.msra.mxu0 %v3613_v33  ;;  %v3663_v33 = vld [vmem:[#allocation8 + $0x104] ss:$8 sps:$4 sm:$0xff]  }
 0x14a   :  { %2646 = vmatprep.subr.bf16.mxu0 %v3618_v34  ;;  %2687 = vmatprep.subr.bf16.mxu1 %v3663_v33 }
 0x14d   :  { %2647 = vmatpush2.bf16.msra.mxu0 %v3616_v38  ;;  %v3661_v38 = vld [vmem:[#allocation8 + $0x100] ss:$8 sps:$4 sm:$0xff]  }
 0x14e   :  { %2648 = vmatprep.subr.bf16.mxu0 %v3621_v39  ;;  %2688 = vmatpush1.bf16.msra.mxu1 %v3661_v38  ;;  %v3666_v39 = vld [vmem:[#allocation8 + $0x1f4] ss:$8 sps:$4 sm:$0xff]  }
 0x14f   :  { %2689 = vmatprep.subr.bf16.mxu1 %v3666_v39 }
 0x151   :  { %2649 = vmatpush2.bf16.msra.mxu0 %v3619_v40  ;;  %v3664_v40 = vld [vmem:[#allocation8 + $0x1f0] ss:$8 sps:$4 sm:$0xff]  }
 0x152   :  { %2650 = vmatprep.subr.bf16.mxu0 %v3624_v41  ;;  %2690 = vmatpush2.bf16.msra.mxu1 %v3664_v40  ;;  %v3669_v41 = vld [vmem:[#allocation8 + $0x1e4] ss:$8 sps:$4 sm:$0xff]  }
 0x153   :  { %2691 = vmatprep.subr.bf16.mxu1 %v3669_v41 }
 0x155   :  { %2651 = vmatpush2.bf16.msra.mxu0 %v3622_v42  ;;  %v3667_v42 = vld [vmem:[#allocation8 + $0x1e0] ss:$8 sps:$4 sm:$0xff]  }
 0x156   :  { %2652 = vmatprep.subr.bf16.mxu0 %v3627_v43  ;;  %2692 = vmatpush2.bf16.msra.mxu1 %v3667_v42 }
 0x159   :  { %2653 = vmatpush2.bf16.msra.mxu0 %v3625_v44 }
 0x15a   :  { %2654 = vmatprep.subr.bf16.mxu0 %v3630_v45  ;;  %v3672_v45 = vld [vmem:[#allocation8 + $0x1d4] ss:$8 sps:$4 sm:$0xff]  }
 0x15b   :  { %2693 = vmatprep.subr.bf16.mxu1 %v3672_v45 }
 0x15d   :  { %2655 = vmatpush2.bf16.msra.mxu0 %v3628_v46 }
 0x15e   :  { %2656 = vmatprep.subr.bf16.mxu0 %v3633_v47  ;;  %v3670_v47 = vld [vmem:[#allocation8 + $0x1d0] ss:$8 sps:$4 sm:$0xff]  }
 0x15f   :  { %2694 = vmatpush2.bf16.msra.mxu1 %v3670_v47 }
 0x161   :  { %2657 = vmatpush2.bf16.msra.mxu0 %v3631_v48 }
 0x162   :  { %2658 = vmatprep.subr.bf16.mxu0 %v3636_v52 }
 0x165   :  { %2659 = vmatpush2.bf16.msra.mxu0 %v3634_v57  ;;  %v3675_v57 = vld [vmem:[#allocation8 + $0x1c4] ss:$8 sps:$4 sm:$0xff]  }
 0x166   :  { %2660 = vmatprep.subr.bf16.mxu0 %v3639_v60  ;;  %2695 = vmatprep.subr.bf16.mxu1 %v3675_v57  ;;  %v3678_v60 = vld [vmem:[#allocation8 + $0x1b4] ss:$8 sps:$4 sm:$0xff]  }
 0x167   :  { %2696 = vmatpush2.bf16.msra.mxu1 %v3673_v59 }
 0x168   :  { %2697 = vmatprep.subr.bf16.mxu1 %v3678_v60 }
 0x169   :  { %2661 = vmatpush2.bf16.msra.mxu0 %v3637_v63  ;;  %v3679_v63 = vld [vmem:[#allocation8 + $0x1a0] ss:$8 sps:$4 sm:$0xff]  }
 0x16b   :  { %2698 = vmatpush2.bf16.msra.mxu1 %v3676_v61 }
 0x16c   :  { %v1951_v12 = vpop.f32.mrf.mxu0  ;;  %2699 = vmatprep.subr.bf16.mxu1 %v3681_v62 }
 0x16d   :  { %v1994_v13 = vpop.f32.mrf.mxu1  ;;  %v1952_v16 = vadd.f32 %v1951_v12, %v1909_v9  ;;  %v3687_v9 = vld [vmem:[#allocation8 + $0x184] ss:$8 sps:$4 sm:$0xff]   ;;  %v3685_v12 = vld [vmem:[#allocation8 + $0x180] ss:$8 sps:$4 sm:$0xff]  }
 0x16e   :  { %v1953_v17 = vpop.f32.mrf.mxu0 }
 0x16f   :  { %v1996_v18 = vpop.f32.mrf.mxu1  ;;  %v3984_v23 = vadd.f32 %v1994_v13, %v1952_v16  ;;  %v1954_v24 = vadd.f32 %v1953_v17, %v1911_v14  ;;  %2700 = vmatpush2.bf16.msra.mxu1 %v3679_v63 }
 0x170   :  { %v1955_v26 = vpop.f32.mrf.mxu0  ;;  %2701 = vmatprep.subr.bf16.mxu1 %v3684_v0 }
 0x171   :  { %v1998_v19 = vpop.f32.mrf.mxu1  ;;  %v3095_v22 = vmul.f32 -1.442695, %v3984_v23  ;;  %v3987_v6 = vadd.f32 %v1996_v18, %v1954_v24  ;;  %v1956_v7 = vadd.f32 %v1955_v26, %v1913_v21  ;;  %v541_v18 = vsub.s32 2, %v3885_v49 }
 0x172   :  { %v1957_v36 = vpop.f32.mrf.mxu0  ;;  %v546_v26 = vrot.slane %v3976_v54, %v545_v20 }
 0x173   :  { %v3096_v28 = vmul.f32 -1.442695, %v3987_v6  ;;  %v1999_v29 = vadd.f32 %v1998_v19, %v1956_v7  ;;  %v1958_v37 = vadd.f32 %v1957_v36, %v1915_v35  ;;  %3688 = vpow2.f32 %v3095_v22  ;;  %v2000_v30 = vpop.f32.mrf.mxu1  ;;  %2702 = vmatpush2.bf16.msra.mxu1 %v3682_v2 }
 0x174   :  { %2703 = vmatprep.subr.bf16.mxu1 %v3687_v9  ;;  %v542_v25 = vrot.slane %v3976_v54, %v541_v18 }
 0x175   :  { %3690 = vpow2.f32 %v3096_v28  ;;  %v3099_v31 = vmul.f32 -1.442695, %v1999_v29  ;;  %v2001_v32 = vadd.f32 %v2000_v30, %v1958_v37 }
 0x177   :  { %3692 = vpow2.f32 %v3099_v31  ;;  %v3100_v34 = vmul.f32 -1.442695, %v2001_v32  ;;  %2704 = vmatpush2.bf16.msra.mxu1 %v3685_v12 }
 0x179   :  { %3694 = vpow2.f32 %v3100_v34 }
 0x180   :  { %v3689_v43 = vpop.eup %3688 }
 0x181   :  { %v2199_v50 = vadd.f32 1.0, %v3689_v43 }
 0x182   :  { %v3691_v44 = vpop.eup %3690 }
 0x183   :  { %v2200_v46 = vadd.f32 1.0, %v3691_v44 }
 0x184   :  { %v3693_v48 = vpop.eup %3692 }
 0x185   :  { %v2203_v51 = vadd.f32 1.0, %v3693_v48  ;;  %3696 = vrcp.f32 %v2200_v46 }
 0x186   :  { %v3695_v52 = vpop.eup %3694 }
 0x187   :  { %3698 = vrcp.f32 %v2203_v51  ;;  %v2204_v58 = vadd.f32 1.0, %v3695_v52 }
 0x188   :  { %3700 = vrcp.f32 %v2199_v50 }
 0x189   :  { %3702 = vrcp.f32 %v2204_v58 }
 0x192   :  { %v3697_v1 = vpop.eup %3696 }
 0x193   :  { %v2224_v10 = vmul.f32 %v3697_v1, %v3987_v6 }
 0x194   :  { %v3699_v3 = vpop.eup %3698 }
 0x195   :  { %v3701_v4 = vpop.eup %3700  ;;  %v2227_v8 = vmul.f32 %v3699_v3, %v1999_v29 }
 0x196   :  { %v3703_v5 = vpop.eup %3702  ;;  %v2223_v13 = vmul.f32 %v3701_v4, %v3984_v23 }
 0x197   :  { %v2228_v11 = vmul.f32 %v3703_v5, %v2001_v32 }
 0x198   :  { %v2231_v15 = vpack.c.bf16 %v2227_v8, %v2223_v13  ;;  %v3830_v13 = vmov 1966171168  }
 0x199   :  { %v2232_v14 = vpack.c.bf16 %v2228_v11, %v2224_v10 }
 0x19b   :  { %2662 = vmatprep.mubr.bf16.mxu0 %v2232_v14  ;;  %v2766_v14 = vunpack.c.l.s4 %v3830_v13 }
 0x19c   :  { %2663 = vmatmul.mubr.bf16.vlgmr.msra.gmra.mxu0 %v2231_v15  ;;  %v3171_v15 = vld.sshfl [vmem:[%s4015_s5] sm:$0x11 pattern:$0x75316420] }
 0x1ac   :  { %v2037_v16 = vpop.f32.mrf.mxu0 }
 0x1ad   :  { %v2080_v17 = vpop.f32.mrf.mxu1  ;;  %v2038_v35 = vadd.f32 %v2037_v16, %v542_v25  ;;  %v2767_v16 = vunpack.c.0.s8 %v2766_v14 }
 0x1ae   :  { %v2039_v21 = vpop.f32.mrf.mxu0 }
 0x1af   :  { %v2082_v24 = vpop.f32.mrf.mxu1  ;;  %v2040_v22 = vadd.f32 %v2039_v21, %v546_v26  ;;  %v2081_v36 = vadd.f32 %v2080_v17, %v2038_v35  ;;  %v2764_v17 = vcombine.high %v3171_v15, %v3171_v15  ;;  %v2770_v18 = vsub.s32 %v2767_v16, %v3885_v49 }
 0x1b0   :  { %v2041_v19 = vpop.f32.mrf.mxu0 }
 0x1b1   :  { %v2084_v23 = vpop.f32.mrf.mxu1  ;;  %v2042_v27 = vadd.f32 %v2041_v19, %v542_v25  ;;  %v2083_v37 = vadd.f32 %v2082_v24, %v2040_v22  ;;  %v2778_v20 = vrot.slane %v2764_v17, %v2770_v18  ;;  %v2771_v21 = vrot.slane %v3171_v15, %v2770_v18  ;;  %v73_v24 = vld [vmem:[#allocation2] sm:$0x1] }
 0x1b2   :  { %v2043_v6 = vpop.f32.mrf.mxu0  ;;  %v3831_v25 = vmov 0   ;;  %v72_v19 = vld [vmem:[%s4014_s4] sm:$0x3]  ;;  %s3832_s4 = smov [#allocation9]  }
 0x1b3   :  { %v2086_v7 = vpop.f32.mrf.mxu1  ;;  %v2044_v56 = vadd.f32 %v2043_v6, %v546_v26  ;;  %v2085_v33 = vadd.f32 %v2084_v23, %v2042_v27  ;;  %2813 = vmatprep.mubr.bf16.mxu0 %v2778_v20  ;;  %3183 = vset.pattern.permute.xlu0 %v3831_v25  ;;  %v2303_v35 = vrot.slane %v72_v19, %v3971_v53  ;;  %s2829_s5 = sshll.u32 %s3832_s4, 4  ;;  %s2830_s5 = int_to_ptr.vmem [resolvable:$true] %s2829_s5 }
 0x1b4   :  { %2749 = vperm.xlu0 %3183, %v73_v24   ;;  %v2307_v22 = vrot.slane %v72_v19, %v537_v55  ;;  %s3796_s24 = scalar_lea.vmem %s2830_s5, 16  ;;  %s3800_s25 = scalar_lea.vmem %s2830_s5, 32 }
 0x1b5   :  { %v2087_v40 = vadd.f32 %v2086_v7, %v2044_v56  ;;  %p3797_p1 = scmp.ne.s32.totalorder %s2830_s5, %s3796_s24  ;;  %p3801_p2 = scmp.lt.s32.totalorder %s2830_s5, %s2830_s5 }
 0x1b6   :  { %p3802_p3 = scmp.lt.s32.totalorder %s3800_s25, %s3796_s24 }
 0x1b8   :  { %p3803_p4 = por %p3802_p3, %p3801_p2 }
 0x1ba   :  { %p3804_p5 = pnand %p3803_p4, %p3797_p1 }
 0x1ec   :  { %v2123_v28 = vpop.f32.mrf.mxu0 }
 0x1ed   :  { %v2166_v29 = vpop.f32.mrf.mxu1  ;;  %v2124_v30 = vadd.f32 %v2123_v28, %v2081_v36 }
 0x1ee   :  { %v2125_v31 = vpop.f32.mrf.mxu0 }
 0x1ef   :  { %v2168_v32 = vpop.f32.mrf.mxu1  ;;  %v2167_v34 = vadd.f32 %v2166_v29, %v2124_v30  ;;  %v2126_v38 = vadd.f32 %v2125_v31, %v2083_v37 }
 0x1f0   :  { %v2127_v39 = vpop.f32.mrf.mxu0 }
 0x1f1   :  { %v2170_v54 = vpop.f32.mrf.mxu1  ;;  %v3097_v41 = vmul.f32 -1.442695, %v2167_v34  ;;  %v2169_v42 = vadd.f32 %v2168_v32, %v2126_v38  ;;  %v2128_v43 = vadd.f32 %v2127_v39, %v2085_v33 }
 0x1f2   :  { %v2129_v44 = vpop.f32.mrf.mxu0 }
 0x1f3   :  { %v3098_v45 = vmul.f32 -1.442695, %v2169_v42  ;;  %v2171_v46 = vadd.f32 %v2170_v54, %v2128_v43  ;;  %v2130_v47 = vadd.f32 %v2129_v44, %v2087_v40  ;;  %3704 = vpow2.f32 %v3097_v41  ;;  %v2172_v48 = vpop.f32.mrf.mxu1 }
 0x1f5   :  { %3706 = vpow2.f32 %v3098_v45  ;;  %v3101_v50 = vmul.f32 -1.442695, %v2171_v46  ;;  %v2173_v51 = vadd.f32 %v2172_v48, %v2130_v47 }
 0x1f7   :  { %3708 = vpow2.f32 %v3101_v50  ;;  %v3102_v52 = vmul.f32 -1.442695, %v2173_v51 }
 0x1f9   :  { %3710 = vpow2.f32 %v3102_v52 }
 0x200   :  { %v3705_v57 = vpop.eup %3704 }
 0x201   :  { %v2201_v61 = vadd.f32 1.0, %v3705_v57 }
 0x202   :  { %v3707_v58 = vpop.eup %3706 }
 0x203   :  { %v2202_v59 = vadd.f32 1.0, %v3707_v58 }
 0x204   :  { %v3709_v60 = vpop.eup %3708 }
 0x205   :  { %v2205_v62 = vadd.f32 1.0, %v3709_v60  ;;  %3712 = vrcp.f32 %v2202_v59 }
 0x206   :  { %v3711_v63 = vpop.eup %3710 }
 0x207   :  { %3714 = vrcp.f32 %v2205_v62  ;;  %v2206_v0 = vadd.f32 1.0, %v3711_v63 }
 0x208   :  { %3716 = vrcp.f32 %v2201_v61 }
 0x209   :  { %3718 = vrcp.f32 %v2206_v0 }
 0x212   :  { %v3713_v1 = vpop.eup %3712 }
 0x213   :  { %v2226_v8 = vmul.f32 %v3713_v1, %v2169_v42 }
 0x214   :  { %v3715_v2 = vpop.eup %3714 }
 0x215   :  { %v3717_v3 = vpop.eup %3716  ;;  %v2229_v5 = vmul.f32 %v3715_v2, %v2171_v46 }
 0x216   :  { %v3719_v4 = vpop.eup %3718  ;;  %v2225_v10 = vmul.f32 %v3717_v3, %v2167_v34 }
 0x217   :  { %v2230_v9 = vmul.f32 %v3719_v4, %v2173_v51 }
 0x218   :  { %v2233_v12 = vpack.c.bf16 %v2229_v5, %v2225_v10 }
 0x219   :  { %v2234_v11 = vpack.c.bf16 %v2230_v9, %v2226_v8 }
 0x21b   :  { %2705 = vmatprep.mubr.bf16.mxu1 %v2234_v11 }
 0x21c   :  { %2706 = vmatmul.mubr.bf16.vlgmr.msra.gmra.mxu1 %v2233_v12 }
 0x22f   :  { %v2750_v63 = vpop.permute.xlu0 %2749 }
 0x230   :  { %v2755_v0 = vrot.slane %v2750_v63, %v3971_v53 }
 0x25c   :  { %v2664_v26 = vpop.f32.mrf.mxu0 }
 0x25d   :  { %v2665_v7 = vadd.f32 %v2664_v26, %v2303_v35 }
 0x25e   :  { %v2666_v23 = vpop.f32.mrf.mxu0 }
 0x25f   :  { %v2667_v27 = vadd.f32 %v2666_v23, %v2307_v22 }
 0x260   :  { %v2668_v6 = vpop.f32.mrf.mxu0 }
 0x261   :  { %v2669_v56 = vadd.f32 %v2668_v6, %v2303_v35 }
 0x262   :  { %v2670_v29 = vpop.f32.mrf.mxu0 }
 0x263   :  { %v2671_v33 = vadd.f32 %v2670_v29, %v2307_v22 }
 0x2dc   :  { %v2707_v36 = vpop.f32.mrf.mxu1 }
 0x2dd   :  { %v2708_v28 = vadd.f32 %v2707_v36, %v2665_v7 }
 0x2de   :  { %v2709_v37 = vpop.f32.mrf.mxu1 }
 0x2df   :  { %v3167_v30 = vmul.f32 -1.442695, %v2708_v28  ;;  %v2710_v31 = vadd.f32 %v2709_v37, %v2667_v27 }
 0x2e0   :  { %v2711_v32 = vpop.f32.mrf.mxu1 }
 0x2e1   :  { %v3168_v34 = vmul.f32 -1.442695, %v2710_v31  ;;  %v2712_v38 = vadd.f32 %v2711_v32, %v2669_v56  ;;  %3720 = vpow2.f32 %v3167_v30 }
 0x2e2   :  { %v2713_v39 = vpop.f32.mrf.mxu1 }
 0x2e3   :  { %3722 = vpow2.f32 %v3168_v34  ;;  %v3169_v54 = vmul.f32 -1.442695, %v2712_v38  ;;  %v2714_v49 = vadd.f32 %v2713_v39, %v2671_v33 }
 0x2e5   :  { %3724 = vpow2.f32 %v3169_v54  ;;  %v3170_v55 = vmul.f32 -1.442695, %v2714_v49 }
 0x2e7   :  { %3726 = vpow2.f32 %v3170_v55 }
 0x2ee   :  { %v3721_v40 = vpop.eup %3720 }
 0x2ef   :  { %v2728_v44 = vadd.f32 1.0, %v3721_v40 }
 0x2f0   :  { %v3723_v41 = vpop.eup %3722 }
 0x2f1   :  { %v2729_v42 = vadd.f32 1.0, %v3723_v41 }
 0x2f2   :  { %v3725_v43 = vpop.eup %3724 }
 0x2f3   :  { %v2730_v45 = vadd.f32 1.0, %v3725_v43  ;;  %3728 = vrcp.f32 %v2729_v42 }
 0x2f4   :  { %v3727_v46 = vpop.eup %3726 }
 0x2f5   :  { %3730 = vrcp.f32 %v2730_v45  ;;  %v2731_v47 = vadd.f32 1.0, %v3727_v46 }
 0x2f6   :  { %3732 = vrcp.f32 %v2728_v44 }
 0x2f7   :  { %3734 = vrcp.f32 %v2731_v47 }
 0x300   :  { %v3729_v48 = vpop.eup %3728 }
 0x301   :  { %v2741_v58 = vmul.f32 %v3729_v48, %v2710_v31 }
 0x302   :  { %v3731_v50 = vpop.eup %3730 }
 0x303   :  { %v3733_v51 = vpop.eup %3732  ;;  %v2742_v57 = vmul.f32 %v3731_v50, %v2712_v38 }
 0x304   :  { %v3735_v52 = vpop.eup %3734  ;;  %v2740_v60 = vmul.f32 %v3733_v51, %v2708_v28 }
 0x305   :  { %v2743_v59 = vmul.f32 %v3735_v52, %v2714_v49 }
 0x306   :  { %v2745_v62 = vpack.c.bf16 %v2742_v57, %v2740_v60 }
 0x307   :  { %v2746_v61 = vpack.c.bf16 %v2743_v59, %v2741_v58 }
 0x309   :  { %2795 = vmatprep.subr.bf16.mxu0 %v2746_v61 }
 0x30a   :  { %2796 = vmatpush1.bf16.xpose.msra.mxu0 %v2745_v62 }
 0x311   :  { %2814 = vmatmul.mubr.bf16.vlgmr.msra.gmra.mxu0 %v2771_v21 }
 0x3d1   :  { %v2815_v1 = vpop.f32.mrf.mxu0 }
 0x3d2   :  { %v2816_v2 = vadd.f32 %v2815_v1, %v2755_v0 }
 0x3d3   :  { %v2817_v3 = vpop.f32.mrf.mxu0 }
 0x3d4   :  { %2822 = vst.msk [vmem:[#allocation9] sm:$0x1] %vm2821_vm0, %v2816_v2 }
 0x3d5   :  { %v2818_v4 = vpop.f32.mrf.mxu0 }
 0x3d6   :  { %3807 = shalt.err (!%p3804_p5)
}
 0x3d7   :  { %2832 = dma.vmem_to_hbm [thread:$0]  %s2830_s5, 16, %s4017_s7, [#allocation5]   ;;  %v2819_v53 = vpop.f32.mrf.mxu0 }
 0x3d8   :  { %3820 = dma.done.wait [#allocation5], 16  }
 0x3d9   :  { %3821 = vsyncadd [#allocation5], 4294967280 }
 0x3da   :  { %2836 = vsyncpa [#allocation4], 1 }
 0x3db   :  { %2837 = vsyncpa [#allocation7], 1 }
 0x3dc   :  { %2838 = vsyncpa [#allocation5], 1 }

</bundles_post_ra>
